<compile_context>
chip_gen: v6e
topology: v6e:2x2x1
jax: 0.10.0
libtpu: 0.0.40
codegen_flags: <defaults>
</compile_context>

<pallas_src>
import functools

import jax
import jax.numpy as jnp
from jax.experimental import pallas as pl
from jax.experimental.pallas import tpu as pltpu

FC1_UNITS = 1024
FC2_UNITS = 512
FC3_UNITS = 64
FC3_PAD = 128          # lane-dense padding for the fc3 output


def _round_up(n, m):
    return (n + m - 1) // m * m


def _cdiv(a, b):
    return -(-a // b)


def _critic_kernel(x_ref, a_ref,
                   w1_ref, b1_ref,
                   w2x_ref, w2a_ref, b2_ref,
                   w3_ref, b3_ref,
                   w4_ref, b4_ref,
                   out_ref,
                   *scratch,
                   manual_weight_dma: bool):
    bf16 = jnp.bfloat16
    f32 = jnp.float32

    if manual_weight_dma:
        # w2x_ref / w3_ref are raw HBM refs (memory_space=pl.ANY). Start their
        # DMA now so the fc1 matmul overlaps the ~1.1 MiB weight fetch.
        w2x_buf, w3_buf, dma_sem = scratch
        w2x_cp = pltpu.make_async_copy(w2x_ref, w2x_buf, dma_sem.at[0])
        w3_cp = pltpu.make_async_copy(w3_ref, w3_buf, dma_sem.at[1])
        w2x_cp.start()
        w3_cp.start()
    else:
        # BlockSpec-resident VMEM tiles (large-batch path).
        w2x_buf, w3_buf = w2x_ref, w3_ref

    x = x_ref[...].astype(bf16)

    # fc1 + relu : [BM, S] @ [S, 1024] -> [BM, 1024]  (bf16 MXU, f32 acc)
    h1 = jnp.dot(x, w1_ref[...], preferred_element_type=f32)
    h1 = jnp.maximum(h1 + b1_ref[...], 0.0).astype(bf16)   # bf16 intermediate

    if manual_weight_dma:
        w2x_cp.wait()
        w3_cp.wait()

    # fc2 + relu on cat(h1, action): split-weight form (no concat needed).
    h2 = jnp.dot(h1, w2x_buf[...], preferred_element_type=f32)

    a = a_ref[...]                       # f32 [BM, A]
    A = a.shape[-1]
    if A <= 16:
        # K=A matmul done on the VPU (unrolled outer-product accumulate):
        # keeps the MXU slot for the M*N-bound dots; w2a stays f32.
        w2a = w2a_ref[...]               # f32 [A, 512]
        for k in range(A):
            h2 = h2 + a[:, k:k + 1] * w2a[k:k + 1, :]
    else:
        h2 = h2 + jnp.dot(a.astype(bf16), w2a_ref[...].astype(bf16),
                          preferred_element_type=f32)
    h2 = jnp.maximum(h2 + b2_ref[...], 0.0).astype(bf16)   # bf16 intermediate

    # fc3 + relu : [BM, 512] @ [512, 128] -> [BM, 128]  (cols 64..127 zero pad)
    h3 = jnp.dot(h2, w3_buf[...], preferred_element_type=f32)
    h3 = jnp.maximum(h3 + b3_ref[...], 0.0)

    # fc4 : N=1 matmul done on the VPU/XLU instead of the MXU:
    #   q = sum(h3 * w4_row, lanes) + b4   (padded lanes contribute 0)
    q = jnp.sum(h3 * w4_ref[...], axis=-1, keepdims=True)
    out_ref[...] = q + b4_ref[...]


def critic_forward(x, action, kparams, *, batch_tile=512):
    """x: [B, state_size] f32, action: [B, action_size] f32 -> Q: [B, 1] f32.

    kparams: output of prepare_kernel_params (bf16 matmul weights, f32 w2a,
    padded fc3/fc4). batch_tile: max rows per grid step.
    """
    B, S = x.shape
    A = action.shape[1]
    (w1, b1, w2x, w2a, b2, w3, b3, w4, b4) = kparams

    # Balanced tiling: bounds batch padding to < 8 rows per tile.
    n_tiles = _cdiv(B, batch_tile)
    bm = _round_up(_cdiv(B, n_tiles), 8)
    b_pad = n_tiles * bm
    if b_pad != B:
        # NOTE: padded rows produce garbage Q values; they are sliced off below.
        x = jnp.pad(x, ((0, b_pad - B), (0, 0)))
        action = jnp.pad(action, ((0, b_pad - B), (0, 0)))

    def resident(arr):
        # Same block for every batch tile -> DMA'd once, stays VMEM-resident.
        nd = arr.ndim
        return pl.BlockSpec(arr.shape, lambda i, _nd=nd: (0,) * _nd)

    # Single-tile (latency-bound) calls: overlap the big weight DMAs with fc1.
    manual_weight_dma = (n_tiles == 1)
    if manual_weight_dma:
        w2x_spec = pl.BlockSpec(memory_space=pl.ANY)
        w3_spec = pl.BlockSpec(memory_space=pl.ANY)
        scratch_shapes = [
            pltpu.VMEM(w2x.shape, w2x.dtype),
            pltpu.VMEM(w3.shape, w3.dtype),
            pltpu.SemaphoreType.DMA((2,)),
        ]
    else:
        w2x_spec = resident(w2x)
        w3_spec = resident(w3)
        scratch_shapes = []

    # Megacore sharding only pays off when there are enough batch tiles to
    # amortize each core fetching its own copy of the resident weights (v7x).
    dim_sem = ("parallel",) if n_tiles >= 4 else ("arbitrary",)
    # Only needed when tiles exceed 512 rows (v5e's 16 MiB scoped default).
    vmem_limit = (32 << 20) if bm > 512 else None

    kernel = functools.partial(_critic_kernel,
                               manual_weight_dma=manual_weight_dma)

    out = pl.pallas_call(
        kernel,
        out_shape=jax.ShapeDtypeStruct((b_pad, 1), jnp.float32),
        grid=(n_tiles,),
        in_specs=[
            pl.BlockSpec((bm, S), lambda i: (i, 0)),       # x tile
            pl.BlockSpec((bm, A), lambda i: (i, 0)),       # action tile
            resident(w1), resident(b1),
            w2x_spec, resident(w2a), resident(b2),
            w3_spec, resident(b3),
            resident(w4), resident(b4),
        ],
        out_specs=pl.BlockSpec((bm, 1), lambda i: (i, 0)),
        scratch_shapes=scratch_shapes,
        compiler_params=pltpu.CompilerParams(
            dimension_semantics=dim_sem,
            vmem_limit_bytes=vmem_limit),
    )(x, action, w1, b1, w2x, w2a, b2, w3, b3, w4, b4)
    return out[:B]


def make_params(key, state_size, action_size):
    """Deterministic synthetic parameters (uniform, PyTorch-Linear-style fan_in
    bound). Stored as f32, weights laid out [in_features, out_features]
    (transpose of torch's [out, in]); fc2 weight pre-split into state / action
    parts."""
    ks = jax.random.split(key, 9)

    def unif(k, shape, lim):
        return jax.random.uniform(k, shape, jnp.float32, -lim, lim)

    lim1 = 1.0 / jnp.sqrt(float(state_size))
    w1 = unif(ks[0], (state_size, FC1_UNITS), lim1)
    b1 = unif(ks[1], (1, FC1_UNITS), lim1)

    lim2 = 1.0 / jnp.sqrt(float(FC1_UNITS + action_size))
    w2x = unif(ks[2], (FC1_UNITS, FC2_UNITS), lim2)
    w2a = unif(ks[3], (action_size, FC2_UNITS), lim2)
    b2 = unif(ks[4], (1, FC2_UNITS), lim2)

    lim3 = 1.0 / jnp.sqrt(float(FC2_UNITS))
    w3 = unif(ks[5], (FC2_UNITS, FC3_UNITS), lim3)
    b3 = unif(ks[6], (1, FC3_UNITS), lim3)

    w4 = unif(ks[7], (FC3_UNITS, 1), 0.003)
    b4 = unif(ks[8], (1, 1), 0.003)

    return (w1, b1, w2x, w2a, b2, w3, b3, w4, b4)


def prepare_kernel_params(params):
    """f32 reference params -> kernel params: bf16 MXU weights (w1, w2x, w3),
    f32 w2a (VPU path), fc3/fc4 padded to 128 lanes (zero pad, exact),
    fc4 weight as a [1, 128] broadcast row."""
    (w1, b1, w2x, w2a, b2, w3, b3, w4, b4) = params
    bf16 = jnp.bfloat16
    pad = FC3_PAD - FC3_UNITS
    w3p = jnp.pad(w3, ((0, 0), (0, pad)))
    b3p = jnp.pad(b3, ((0, 0), (0, pad)))
    w4_row = jnp.pad(w4.T, ((0, 0), (0, pad)))           # [1, 128], f32 (VPU)
    return (w1.astype(bf16), b1,
            w2x.astype(bf16), w2a.astype(jnp.float32), b2,
            w3p.astype(bf16), b3p,
            w4_row.astype(jnp.float32), b4)


def critic_reference(x, action, params):
    """Pure-JAX reference reproducing the PyTorch forward (explicit concat),
    mirroring the kernel's bf16 matmul inputs / f32 accumulation. NOTE: this
    validates the kernel at its own (bf16) precision, not the f32 torch model."""
    (w1, b1, w2x, w2a, b2, w3, b3, w4, b4) = params
    bf16, f32 = jnp.bfloat16, jnp.float32
    h1 = jax.nn.relu(
        jnp.dot(x.astype(bf16), w1.astype(bf16), preferred_element_type=f32) + b1)
    cat = jnp.concatenate([h1, action], axis=1).astype(bf16)
    w2 = jnp.concatenate([w2x, w2a], axis=0).astype(bf16)
    h2 = jax.nn.relu(jnp.dot(cat, w2, preferred_element_type=f32) + b2)
    h3 = jax.nn.relu(
        jnp.dot(h2.astype(bf16), w3.astype(bf16), preferred_element_type=f32) + b3)
    return h3 @ w4 + b4


if __name__ == "__main__":
    state_size = 32
    action_size = 8

    key = jax.random.PRNGKey(0)
    k_x, k_a, k_p = jax.random.split(key, 3)
    params = make_params(k_p, state_size, action_size)
    kparams = prepare_kernel_params(params)

    # 1) Small-batch inference path (grid == 1, manual weight-DMA overlap).
    batch = 8
    x = jax.random.normal(k_x, (batch, state_size), jnp.float32)
    action = jax.random.normal(k_a, (batch, action_size), jnp.float32)
    q = jax.block_until_ready(critic_forward(x, action, kparams))
    q_ref = critic_reference(x, action, params)
    assert q.shape == (batch, 1)
    assert jnp.allclose(q, q_ref, atol=1e-2, rtol=1e-2), "mismatch (B=8)"

    # 2) Multi-tile path (resident BlockSpec weights, balanced tiles).
    batch2 = 600
    x2 = jax.random.normal(k_x, (batch2, state_size), jnp.float32)
    a2 = jax.random.normal(k_a, (batch2, action_size), jnp.float32)
    q2 = jax.block_until_ready(critic_forward(x2, a2, kparams))
    q2_ref = critic_reference(x2, a2, params)
    assert q2.shape == (batch2, 1)
    assert jnp.allclose(q2, q2_ref, atol=1e-2, rtol=1e-2), "mismatch (B=600)"

    print("KERNEL_OK")
</pallas_src>

<mosaic_0001>
module attributes {stable_mosaic.version = 11 : i64} {
  func.func @_critic_kernel(%arg0: i32, %arg1: memref<8x32xf32, #tpu.memory_space<vmem>>, %arg2: memref<8x8xf32, #tpu.memory_space<vmem>>, %arg3: memref<32x1024xbf16, #tpu.memory_space<vmem>>, %arg4: memref<1x1024xf32, #tpu.memory_space<vmem>>, %arg5: memref<1024x512xbf16, #tpu.memory_space<any>>, %arg6: memref<8x512xf32, #tpu.memory_space<vmem>>, %arg7: memref<1x512xf32, #tpu.memory_space<vmem>>, %arg8: memref<512x128xbf16, #tpu.memory_space<any>>, %arg9: memref<1x128xf32, #tpu.memory_space<vmem>>, %arg10: memref<1x128xf32, #tpu.memory_space<vmem>>, %arg11: memref<1x1xf32, #tpu.memory_space<vmem>>, %arg12: memref<8x1xf32, #tpu.memory_space<vmem>>, %arg13: memref<1024x512xbf16, #tpu.memory_space<vmem>>, %arg14: memref<512x128xbf16, #tpu.memory_space<vmem>>, %arg15: memref<2x!tpu.dma_semaphore, #tpu.memory_space<semaphore_mem>>) attributes {dimension_semantics = [#tpu.dimension_semantics<arbitrary>], iteration_bounds = array<i64: 1>, scalar_prefetch = 0 : i64, scratch_operands = 3 : i64, tpu.core_type = #tpu.core_type<tc>, window_params = [{transform_indices = @transform_0, window_bounds = array<i64: 8, 32>}, {transform_indices = @transform_1, window_bounds = array<i64: 8, 8>}, {pipeline_mode = #tpu.pipeline_mode<synchronous>, transform_indices = @transform_2, window_bounds = array<i64: 32, 1024>}, {pipeline_mode = #tpu.pipeline_mode<synchronous>, transform_indices = @transform_3, window_bounds = array<i64: 1, 1024>}, {}, {pipeline_mode = #tpu.pipeline_mode<synchronous>, transform_indices = @transform_5, window_bounds = array<i64: 8, 512>}, {pipeline_mode = #tpu.pipeline_mode<synchronous>, transform_indices = @transform_6, window_bounds = array<i64: 1, 512>}, {}, {pipeline_mode = #tpu.pipeline_mode<synchronous>, transform_indices = @transform_8, window_bounds = array<i64: 1, 128>}, {pipeline_mode = #tpu.pipeline_mode<synchronous>, transform_indices = @transform_9, window_bounds = array<i64: 1, 128>}, {pipeline_mode = #tpu.pipeline_mode<synchronous>, transform_indices = @transform_10, window_bounds = array<i64: 1, 1>}, {transform_indices = @transform_11, window_bounds = array<i64: 8, 1>}]} {
    %c0_i32 = arith.constant 0 : i32
    %0 = tpu.memref_slice %arg15[%c0_i32] : memref<2x!tpu.dma_semaphore, #tpu.memory_space<semaphore_mem>> -> memref<1x!tpu.dma_semaphore, #tpu.memory_space<semaphore_mem>>
    %1 = tpu.memref_squeeze %0 : memref<1x!tpu.dma_semaphore, #tpu.memory_space<semaphore_mem>> -> memref<!tpu.dma_semaphore, #tpu.memory_space<semaphore_mem>>
    tpu.enqueue_dma source(%arg5 : memref<1024x512xbf16, #tpu.memory_space<any>>) target(%arg13 : memref<1024x512xbf16, #tpu.memory_space<vmem>>) target_semaphore(%1 : memref<!tpu.dma_semaphore, #tpu.memory_space<semaphore_mem>>)
    %c1_i32 = arith.constant 1 : i32
    %2 = tpu.memref_slice %arg15[%c1_i32] : memref<2x!tpu.dma_semaphore, #tpu.memory_space<semaphore_mem>> -> memref<1x!tpu.dma_semaphore, #tpu.memory_space<semaphore_mem>>
    %3 = tpu.memref_squeeze %2 : memref<1x!tpu.dma_semaphore, #tpu.memory_space<semaphore_mem>> -> memref<!tpu.dma_semaphore, #tpu.memory_space<semaphore_mem>>
    tpu.enqueue_dma source(%arg8 : memref<512x128xbf16, #tpu.memory_space<any>>) target(%arg14 : memref<512x128xbf16, #tpu.memory_space<vmem>>) target_semaphore(%3 : memref<!tpu.dma_semaphore, #tpu.memory_space<semaphore_mem>>)
    %c0 = arith.constant 0 : index
    %c0_0 = arith.constant 0 : index
    %4 = vector.load %arg1[%c0, %c0_0] : memref<8x32xf32, #tpu.memory_space<vmem>>, vector<8x32xf32>
    %5 = arith.truncf %4 : vector<8x32xf32> to vector<8x32xbf16>
    %c0_1 = arith.constant 0 : index
    %c0_2 = arith.constant 0 : index
    %6 = vector.load %arg3[%c0_1, %c0_2] : memref<32x1024xbf16, #tpu.memory_space<vmem>>, vector<32x1024xbf16>
    %cst = arith.constant dense<0.000000e+00> : vector<8x1024xf32>
    %7 = tpu.matmul %5, %6, %cst {dimension_numbers = #tpu.dot_dimension_numbers<[1], [0], [0], [1], [0, 0, 1, 1], [], []>} : vector<8x32xbf16>, vector<32x1024xbf16>, vector<8x1024xf32> -> vector<8x1024xf32>
    %c0_3 = arith.constant 0 : index
    %c0_4 = arith.constant 0 : index
    %8 = vector.load %arg4[%c0_3, %c0_4] : memref<1x1024xf32, #tpu.memory_space<vmem>>, vector<1x1024xf32>
    %9 = vector.broadcast %8 : vector<1x1024xf32> to vector<8x1024xf32>
    %10 = arith.addf %7, %9 : vector<8x1024xf32>
    %cst_5 = arith.constant 0.000000e+00 : f32
    %11 = vector.broadcast %cst_5 : f32 to vector<8x1024xf32>
    %12 = arith.maximumf %10, %11 : vector<8x1024xf32>
    %13 = arith.truncf %12 : vector<8x1024xf32> to vector<8x1024xbf16>
    %c0_i32_6 = arith.constant 0 : i32
    %14 = tpu.memref_slice %arg15[%c0_i32_6] : memref<2x!tpu.dma_semaphore, #tpu.memory_space<semaphore_mem>> -> memref<1x!tpu.dma_semaphore, #tpu.memory_space<semaphore_mem>>
    %15 = tpu.memref_squeeze %14 : memref<1x!tpu.dma_semaphore, #tpu.memory_space<semaphore_mem>> -> memref<!tpu.dma_semaphore, #tpu.memory_space<semaphore_mem>>
    tpu.wait_dma2 semaphore(%15 : memref<!tpu.dma_semaphore, #tpu.memory_space<semaphore_mem>>) src(%arg5 : memref<1024x512xbf16, #tpu.memory_space<any>>) dst(%arg13 : memref<1024x512xbf16, #tpu.memory_space<vmem>>)
    %c1_i32_7 = arith.constant 1 : i32
    %16 = tpu.memref_slice %arg15[%c1_i32_7] : memref<2x!tpu.dma_semaphore, #tpu.memory_space<semaphore_mem>> -> memref<1x!tpu.dma_semaphore, #tpu.memory_space<semaphore_mem>>
    %17 = tpu.memref_squeeze %16 : memref<1x!tpu.dma_semaphore, #tpu.memory_space<semaphore_mem>> -> memref<!tpu.dma_semaphore, #tpu.memory_space<semaphore_mem>>
    tpu.wait_dma2 semaphore(%17 : memref<!tpu.dma_semaphore, #tpu.memory_space<semaphore_mem>>) src(%arg8 : memref<512x128xbf16, #tpu.memory_space<any>>) dst(%arg14 : memref<512x128xbf16, #tpu.memory_space<vmem>>)
    %c0_8 = arith.constant 0 : index
    %c0_9 = arith.constant 0 : index
    %18 = vector.load %arg13[%c0_8, %c0_9] : memref<1024x512xbf16, #tpu.memory_space<vmem>>, vector<1024x512xbf16>
    %cst_10 = arith.constant dense<0.000000e+00> : vector<8x512xf32>
    %19 = tpu.matmul %13, %18, %cst_10 {dimension_numbers = #tpu.dot_dimension_numbers<[1], [0], [0], [1], [0, 0, 1, 1], [], []>} : vector<8x1024xbf16>, vector<1024x512xbf16>, vector<8x512xf32> -> vector<8x512xf32>
    %c0_11 = arith.constant 0 : index
    %c0_12 = arith.constant 0 : index
    %20 = vector.load %arg2[%c0_11, %c0_12] : memref<8x8xf32, #tpu.memory_space<vmem>>, vector<8x8xf32>
    %c0_13 = arith.constant 0 : index
    %c0_14 = arith.constant 0 : index
    %21 = vector.load %arg6[%c0_13, %c0_14] : memref<8x512xf32, #tpu.memory_space<vmem>>, vector<8x512xf32>
    %22 = vector.extract_strided_slice %20 {offsets = [0, 0], sizes = [8, 1], strides = [1, 1]} : vector<8x8xf32> to vector<8x1xf32>
    %23 = vector.extract_strided_slice %21 {offsets = [0, 0], sizes = [1, 512], strides = [1, 1]} : vector<8x512xf32> to vector<1x512xf32>
    %24 = vector.broadcast %22 : vector<8x1xf32> to vector<8x512xf32>
    %25 = vector.broadcast %23 : vector<1x512xf32> to vector<8x512xf32>
    %26 = arith.mulf %24, %25 : vector<8x512xf32>
    %27 = arith.addf %19, %26 : vector<8x512xf32>
    %28 = vector.extract_strided_slice %20 {offsets = [0, 1], sizes = [8, 1], strides = [1, 1]} : vector<8x8xf32> to vector<8x1xf32>
    %29 = vector.extract_strided_slice %21 {offsets = [1, 0], sizes = [1, 512], strides = [1, 1]} : vector<8x512xf32> to vector<1x512xf32>
    %30 = vector.broadcast %28 : vector<8x1xf32> to vector<8x512xf32>
    %31 = vector.broadcast %29 : vector<1x512xf32> to vector<8x512xf32>
    %32 = arith.mulf %30, %31 : vector<8x512xf32>
    %33 = arith.addf %27, %32 : vector<8x512xf32>
    %34 = vector.extract_strided_slice %20 {offsets = [0, 2], sizes = [8, 1], strides = [1, 1]} : vector<8x8xf32> to vector<8x1xf32>
    %35 = vector.extract_strided_slice %21 {offsets = [2, 0], sizes = [1, 512], strides = [1, 1]} : vector<8x512xf32> to vector<1x512xf32>
    %36 = vector.broadcast %34 : vector<8x1xf32> to vector<8x512xf32>
    %37 = vector.broadcast %35 : vector<1x512xf32> to vector<8x512xf32>
    %38 = arith.mulf %36, %37 : vector<8x512xf32>
    %39 = arith.addf %33, %38 : vector<8x512xf32>
    %40 = vector.extract_strided_slice %20 {offsets = [0, 3], sizes = [8, 1], strides = [1, 1]} : vector<8x8xf32> to vector<8x1xf32>
    %41 = vector.extract_strided_slice %21 {offsets = [3, 0], sizes = [1, 512], strides = [1, 1]} : vector<8x512xf32> to vector<1x512xf32>
    %42 = vector.broadcast %40 : vector<8x1xf32> to vector<8x512xf32>
    %43 = vector.broadcast %41 : vector<1x512xf32> to vector<8x512xf32>
    %44 = arith.mulf %42, %43 : vector<8x512xf32>
    %45 = arith.addf %39, %44 : vector<8x512xf32>
    %46 = vector.extract_strided_slice %20 {offsets = [0, 4], sizes = [8, 1], strides = [1, 1]} : vector<8x8xf32> to vector<8x1xf32>
    %47 = vector.extract_strided_slice %21 {offsets = [4, 0], sizes = [1, 512], strides = [1, 1]} : vector<8x512xf32> to vector<1x512xf32>
    %48 = vector.broadcast %46 : vector<8x1xf32> to vector<8x512xf32>
    %49 = vector.broadcast %47 : vector<1x512xf32> to vector<8x512xf32>
    %50 = arith.mulf %48, %49 : vector<8x512xf32>
    %51 = arith.addf %45, %50 : vector<8x512xf32>
    %52 = vector.extract_strided_slice %20 {offsets = [0, 5], sizes = [8, 1], strides = [1, 1]} : vector<8x8xf32> to vector<8x1xf32>
    %53 = vector.extract_strided_slice %21 {offsets = [5, 0], sizes = [1, 512], strides = [1, 1]} : vector<8x512xf32> to vector<1x512xf32>
    %54 = vector.broadcast %52 : vector<8x1xf32> to vector<8x512xf32>
    %55 = vector.broadcast %53 : vector<1x512xf32> to vector<8x512xf32>
    %56 = arith.mulf %54, %55 : vector<8x512xf32>
    %57 = arith.addf %51, %56 : vector<8x512xf32>
    %58 = vector.extract_strided_slice %20 {offsets = [0, 6], sizes = [8, 1], strides = [1, 1]} : vector<8x8xf32> to vector<8x1xf32>
    %59 = vector.extract_strided_slice %21 {offsets = [6, 0], sizes = [1, 512], strides = [1, 1]} : vector<8x512xf32> to vector<1x512xf32>
    %60 = vector.broadcast %58 : vector<8x1xf32> to vector<8x512xf32>
    %61 = vector.broadcast %59 : vector<1x512xf32> to vector<8x512xf32>
    %62 = arith.mulf %60, %61 : vector<8x512xf32>
    %63 = arith.addf %57, %62 : vector<8x512xf32>
    %64 = vector.extract_strided_slice %20 {offsets = [0, 7], sizes = [8, 1], strides = [1, 1]} : vector<8x8xf32> to vector<8x1xf32>
    %65 = vector.extract_strided_slice %21 {offsets = [7, 0], sizes = [1, 512], strides = [1, 1]} : vector<8x512xf32> to vector<1x512xf32>
    %66 = vector.broadcast %64 : vector<8x1xf32> to vector<8x512xf32>
    %67 = vector.broadcast %65 : vector<1x512xf32> to vector<8x512xf32>
    %68 = arith.mulf %66, %67 : vector<8x512xf32>
    %69 = arith.addf %63, %68 : vector<8x512xf32>
    %c0_15 = arith.constant 0 : index
    %c0_16 = arith.constant 0 : index
    %70 = vector.load %arg7[%c0_15, %c0_16] : memref<1x512xf32, #tpu.memory_space<vmem>>, vector<1x512xf32>
    %71 = vector.broadcast %70 : vector<1x512xf32> to vector<8x512xf32>
    %72 = arith.addf %69, %71 : vector<8x512xf32>
    %cst_17 = arith.constant 0.000000e+00 : f32
    %73 = vector.broadcast %cst_17 : f32 to vector<8x512xf32>
    %74 = arith.maximumf %72, %73 : vector<8x512xf32>
    %75 = arith.truncf %74 : vector<8x512xf32> to vector<8x512xbf16>
    %c0_18 = arith.constant 0 : index
    %c0_19 = arith.constant 0 : index
    %76 = vector.load %arg14[%c0_18, %c0_19] : memref<512x128xbf16, #tpu.memory_space<vmem>>, vector<512x128xbf16>
    %cst_20 = arith.constant dense<0.000000e+00> : vector<8x128xf32>
    %77 = tpu.matmul %75, %76, %cst_20 {dimension_numbers = #tpu.dot_dimension_numbers<[1], [0], [0], [1], [0, 0, 1, 1], [], []>} : vector<8x512xbf16>, vector<512x128xbf16>, vector<8x128xf32> -> vector<8x128xf32>
    %c0_21 = arith.constant 0 : index
    %c0_22 = arith.constant 0 : index
    %78 = vector.load %arg9[%c0_21, %c0_22] : memref<1x128xf32, #tpu.memory_space<vmem>>, vector<1x128xf32>
    %79 = vector.broadcast %78 : vector<1x128xf32> to vector<8x128xf32>
    %80 = arith.addf %77, %79 : vector<8x128xf32>
    %cst_23 = arith.constant 0.000000e+00 : f32
    %81 = vector.broadcast %cst_23 : f32 to vector<8x128xf32>
    %82 = arith.maximumf %80, %81 : vector<8x128xf32>
    %c0_24 = arith.constant 0 : index
    %c0_25 = arith.constant 0 : index
    %83 = vector.load %arg10[%c0_24, %c0_25] : memref<1x128xf32, #tpu.memory_space<vmem>>, vector<1x128xf32>
    %84 = vector.broadcast %83 : vector<1x128xf32> to vector<8x128xf32>
    %85 = arith.mulf %82, %84 : vector<8x128xf32>
    %cst_26 = arith.constant dense<0.000000e+00> : vector<8xf32>
    %86 = vector.multi_reduction <add>, %85, %cst_26 [1] : vector<8x128xf32> to vector<8xf32>
    %87 = vector.shape_cast %86 : vector<8xf32> to vector<8x1xf32>
    %c0_27 = arith.constant 0 : index
    %c0_28 = arith.constant 0 : index
    %88 = vector.load %arg11[%c0_27, %c0_28] : memref<1x1xf32, #tpu.memory_space<vmem>>, vector<1x1xf32>
    %89 = vector.broadcast %88 : vector<1x1xf32> to vector<8x1xf32>
    %90 = arith.addf %87, %89 : vector<8x1xf32>
    %c0_29 = arith.constant 0 : index
    %c0_30 = arith.constant 0 : index
    %91 = vector.load %arg12[%c0_29, %c0_30] : memref<8x1xf32, #tpu.memory_space<vmem>>, vector<8x1xf32>
    tpu.vector_store %arg12[%c0_29, %c0_30], %90 {strides = array<i32>} : memref<8x1xf32, #tpu.memory_space<vmem>>, vector<8x1xf32>,
    return
  }
  func.func @transform_0(%arg0: i32) -> (i32, i32) {
    %c0_i32 = arith.constant 0 : i32
    %c0_i32_0 = arith.constant 0 : i32
    return %arg0, %c0_i32 : i32, i32
  }
  func.func @transform_1(%arg0: i32) -> (i32, i32) {
    %c0_i32 = arith.constant 0 : i32
    %c0_i32_0 = arith.constant 0 : i32
    return %arg0, %c0_i32 : i32, i32
  }
  func.func @transform_2(%arg0: i32) -> (i32, i32) {
    %c0_i32 = arith.constant 0 : i32
    %c0_i32_0 = arith.constant 0 : i32
    %c0_i32_1 = arith.constant 0 : i32
    return %c0_i32, %c0_i32_0 : i32, i32
  }
  func.func @transform_3(%arg0: i32) -> (i32, i32) {
    %c0_i32 = arith.constant 0 : i32
    %c0_i32_0 = arith.constant 0 : i32
    %c0_i32_1 = arith.constant 0 : i32
    return %c0_i32, %c0_i32_0 : i32, i32
  }
  func.func @transform_5(%arg0: i32) -> (i32, i32) {
    %c0_i32 = arith.constant 0 : i32
    %c0_i32_0 = arith.constant 0 : i32
    %c0_i32_1 = arith.constant 0 : i32
    return %c0_i32, %c0_i32_0 : i32, i32
  }
  func.func @transform_6(%arg0: i32) -> (i32, i32) {
    %c0_i32 = arith.constant 0 : i32
    %c0_i32_0 = arith.constant 0 : i32
    %c0_i32_1 = arith.constant 0 : i32
    return %c0_i32, %c0_i32_0 : i32, i32
  }
  func.func @transform_8(%arg0: i32) -> (i32, i32) {
    %c0_i32 = arith.constant 0 : i32
    %c0_i32_0 = arith.constant 0 : i32
    %c0_i32_1 = arith.constant 0 : i32
    return %c0_i32, %c0_i32_0 : i32, i32
  }
  func.func @transform_9(%arg0: i32) -> (i32, i32) {
    %c0_i32 = arith.constant 0 : i32
    %c0_i32_0 = arith.constant 0 : i32
    %c0_i32_1 = arith.constant 0 : i32
    return %c0_i32, %c0_i32_0 : i32, i32
  }
  func.func @transform_10(%arg0: i32) -> (i32, i32) {
    %c0_i32 = arith.constant 0 : i32
    %c0_i32_0 = arith.constant 0 : i32
    %c0_i32_1 = arith.constant 0 : i32
    return %c0_i32, %c0_i32_0 : i32, i32
  }
  func.func @transform_11(%arg0: i32) -> (i32, i32) {
    %c0_i32 = arith.constant 0 : i32
    %c0_i32_0 = arith.constant 0 : i32
    return %arg0, %c0_i32 : i32, i32
  }
}

</mosaic_0001>

<bundles_post_ra>
// kernel: tpu_custom_call.1
= control target key start
LH: loop header
LB: loop body
LE: loop exit
PB: predicated region body
PF: predicated region fallthrough
CT: control target
= control target key end

     0   :  { %s4217_s0 = inlined_call_operand.hbm [shape: f32[8,32], index: 0, kind: input, shape index: {}]   ;;  %s4218_s1 = inlined_call_operand.hbm [shape: f32[8,8], index: 1, kind: input, shape index: {}]   ;;  %s4219_s2 = inlined_call_operand.hbm [shape: bf16[32,1024], index: 2, kind: input, shape index: {}]   ;;  %s4220_s3 = inlined_call_operand.hbm [shape: f32[1,1024], index: 3, kind: input, shape index: {}]   ;;  %s4221_s4 = inlined_call_operand.hbm [shape: bf16[1024,512], index: 4, kind: input, shape index: {}]   ;;  %s4222_s5 = inlined_call_operand.hbm [shape: f32[8,512], index: 5, kind: input, shape index: {}]   ;;  %s4223_s6 = inlined_call_operand.vmem [shape: f32[1,512], index: 6, kind: input, shape index: {}]   ;;  %s4224_s7 = inlined_call_operand.hbm [shape: bf16[512,128], index: 7, kind: input, shape index: {}]   ;;  %s4225_s8 = inlined_call_operand.vmem [shape: f32[1,128], index: 8, kind: input, shape index: {}]   ;;  %s4226_s9 = inlined_call_operand.vmem [shape: f32[1,128], index: 9, kind: input, shape index: {}]   ;;  %s4227_s10 = inlined_call_operand.<no memory space> [shape: f32[1,1], index: 10, kind: input, shape index: {}]   ;;  %s4228_s11 = inlined_call_operand.vmem [shape: f32[8,1], index: 11, kind: output, shape index: {}]  }
   0x1   :  { %v16_v0 = vstv %s4227_s10 }
   0x2   :  { %17 = vst [vmem:[#allocation5] sm:$0x1] %v16_v0 }
   0x3   :  { %18 = vsyncpa [#allocation7], 0 }
   0x4   :  { %19 = vsyncpa [#allocation9], 0 }
   0x5   :  { %20 = vsyncpa [#allocation12], 0  ;;  %s3909_s19 = smov [#allocation8]   ;;  %s3910_s21 = smov [#allocation11]  }
   0x6   :  { %s37_s20 = sshll.u32 %s3909_s19, 4  ;;  %s59_s22 = sshll.u32 %s3910_s21, 4  ;;  %s38_s20 = int_to_ptr.vmem [resolvable:$true] %s37_s20  ;;  %s60_s22 = int_to_ptr.vmem [resolvable:$true] %s59_s22 }
   0x7   :  { %s3767_s23 = scalar_lea.vmem %s38_s20, 128  ;;  %p3772_p1 = scmp.lt.s32.totalorder %s38_s20, %s38_s20 }
   0x8   :  { %p3768_p0 = scmp.ne.s32.totalorder %s38_s20, %s3767_s23  ;;  %p3773_p2 = scmp.lt.s32.totalorder %s3767_s23, %s3767_s23 }
   0xa   :  { %p3774_p3 = por %p3773_p2, %p3772_p1 }
   0xc   :  { %p3775_p4 = pnand %p3774_p3, %p3768_p0 }
   0xe   :  { %3778 = shalt.err (!%p3775_p4)
}
   0xf   :  { %40 = dma.hbm_to_vmem [thread:$0]  %s4218_s1, 128, %s38_s20, [#allocation9]  }
  0x10   :  { %s3787_s10 = scalar_lea.vmem %s60_s22, 128  ;;  %p3792_p6 = scmp.lt.s32.totalorder %s60_s22, %s60_s22 }
  0x11   :  { %p3788_p5 = scmp.ne.s32.totalorder %s60_s22, %s3787_s10  ;;  %p3793_p7 = scmp.lt.s32.totalorder %s3787_s10, %s3787_s10 }
  0x13   :  { %p3794_p8 = por %p3793_p7, %p3792_p6 }
  0x15   :  { %p3795_p9 = pnand %p3794_p8, %p3788_p5 }
  0x17   :  { %3798 = shalt.err (!%p3795_p9)
}
  0x18   :  { %62 = dma.hbm_to_vmem [thread:$0]  %s4220_s3, 128, %s60_s22, [#allocation12]  }
  0x19   :  { %s3911_s28 = smov [#allocation6]   ;;  %s3912_s30 = smov [#allocation10]  }
  0x1a   :  { %s27_s29 = sshll.u32 %s3911_s28, 4  ;;  %s46_s12 = sshll.u32 %s3912_s30, 4  ;;  %s28_s29 = int_to_ptr.vmem [resolvable:$true] %s27_s29  ;;  %s47_s12 = int_to_ptr.vmem [resolvable:$true] %s46_s12 }
  0x1b   :  { %s3807_s13 = scalar_lea.vmem %s28_s29, 128  ;;  %p3812_p11 = scmp.lt.s32.totalorder %s28_s29, %s28_s29 }
  0x1c   :  { %p3808_p10 = scmp.ne.s32.totalorder %s28_s29, %s3807_s13  ;;  %p3813_p12 = scmp.lt.s32.totalorder %s3807_s13, %s3807_s13 }
  0x1e   :  { %p3814_p13 = por %p3813_p12, %p3812_p11 }
  0x20   :  { %p3815_p0 = pnand %p3814_p13, %p3808_p10 }
  0x22   :  { %3818 = shalt.err (!%p3815_p0)
}
  0x23   :  { %30 = dma.hbm_to_vmem [thread:$0]  %s4217_s0, 128, %s28_s29, [#allocation7]  }
  0x24   :  { %s3827_s15 = scalar_lea.vmem %s47_s12, 2048  ;;  %p3832_p2 = scmp.lt.s32.totalorder %s47_s12, %s47_s12 }
  0x25   :  { %p3828_p1 = scmp.ne.s32.totalorder %s47_s12, %s3827_s15  ;;  %p3833_p3 = scmp.lt.s32.totalorder %s3827_s15, %s3827_s15 }
  0x27   :  { %p3834_p4 = por %p3833_p3, %p3832_p2 }
  0x29   :  { %p3835_p5 = pnand %p3834_p4, %p3828_p1 }
  0x2b   :  { %3838 = shalt.err (!%p3835_p5)
}
  0x2c   :  { %s3913_s3 = smov 512   ;;  %s3914_s16 = smov 32  }
  0x2d   :  { %52 = dma.hbm_to_vmem [thread:$0]  %s4219_s2, 2048, %s47_s12, [#allocation9], %s3913_s3, %s3913_s3, %s3914_s16  }
  0x2e   :  { %s3915_s19 = smov [#allocation13]  }
  0x2f   :  { %s69_s20 = sshll.u32 %s3915_s19, 4  ;;  %s70_s20 = int_to_ptr.vmem [resolvable:$true] %s69_s20 }
  0x30   :  { %s3847_s21 = scalar_lea.vmem %s70_s20, 512  ;;  %p3852_p7 = scmp.lt.s32.totalorder %s70_s20, %s70_s20 }
  0x31   :  { %p3848_p6 = scmp.ne.s32.totalorder %s70_s20, %s3847_s21  ;;  %p3853_p8 = scmp.lt.s32.totalorder %s3847_s21, %s3847_s21 }
  0x33   :  { %p3854_p9 = por %p3853_p8, %p3852_p7 }
  0x35   :  { %p3855_p10 = pnand %p3854_p9, %p3848_p6 }
  0x37   :  { %3858 = shalt.err (!%p3855_p10)
}
  0x38   :  { %72 = dma.hbm_to_vmem [thread:$0]  %s4222_s5, 512, %s70_s20, [#allocation12]  }
  0x39   :  { %3899 = dma.done.wait [#allocation7], 128  }
  0x3a   :  { %3900 = vsyncadd [#allocation7], 4294967168 }
  0x3b   :  { %3901 = dma.done.wait [#allocation9], 2176  }
  0x3c   :  { %3902 = vsyncadd [#allocation9], 4294965120 }
  0x3d   :  { %3903 = dma.done.wait [#allocation12], 640  }
  0x3e   :  { %3904 = vsyncadd [#allocation12], 4294966656  ;;  %v3916_v1 = vmov 0   ;;  %v130_v2 = vld [vmem:[#allocation10 + $0x40] sm:$0xff]  ;;  %v131_v4 = vld [vmem:[#allocation10 + $0x48] sm:$0xff]  ;;  %vm260_vm0 = vcmask 261120  }
  0x3f   :  { %296 = vmatprep.mubr.bf16.mxu0 %v3916_v1  ;;  %337 = vmatprep.mubr.bf16.mxu1 %v3916_v1  ;;  %v134_v3 = vld [vmem:[#allocation10 + $0x60] sm:$0xff]  ;;  %v135_v6 = vld [vmem:[#allocation10 + $0x68] sm:$0xff]  ;;  %v132_v16 = vld [vmem:[#allocation10 + $0x50] sm:$0xff]  ;;  %s3917_s2 = smov [#allocation2]   ;;  %s3918_s23 = smov [#allocation3]  }
  0x40   :  { %v2969_v5 = vcombine.high %v130_v2, %v134_v3  ;;  %v2968_v7 = vcombine.low %v130_v2, %v134_v3  ;;  %v122_v8 = vld [vmem:[#allocation10] sm:$0xff]  ;;  %v2971_v10 = vcombine.high %v131_v4, %v135_v6  ;;  %v2970_v11 = vcombine.low %v131_v4, %v135_v6  ;;  %v123_v13 = vld [vmem:[#allocation10 + $0x8] sm:$0xff]  ;;  %v136_v17 = vld [vmem:[#allocation10 + $0x70] sm:$0xff]  ;;  %s104_s5 = sshll.u32 %s3917_s2, 4  ;;  %s116_s24 = sshll.u32 %s3918_s23, 4  ;;  %s105_s5 = int_to_ptr.vmem [resolvable:$true] %s104_s5  ;;  %s117_s24 = int_to_ptr.vmem [resolvable:$true] %s116_s24 }
  0x41   :  { %v126_v9 = vld [vmem:[#allocation10 + $0x20] sm:$0xff]  ;;  %v127_v14 = vld [vmem:[#allocation10 + $0x28] sm:$0xff]  ;;  %v133_v18 = vld [vmem:[#allocation10 + $0x58] sm:$0xff]  ;;  %v2973_v23 = vcombine.high %v132_v16, %v136_v17  ;;  %v2972_v30 = vcombine.low %v132_v16, %v136_v17  ;;  %s3867_s25 = scalar_lea.vmem %s105_s5, 32768  ;;  %p3872_p12 = scmp.lt.s32.totalorder %s105_s5, %s105_s5 }
  0x42   :  { %v2961_v12 = vcombine.high %v122_v8, %v126_v9  ;;  %276 = vmatprep.subr.bf16.mxu0 %v2969_v5  ;;  %v2963_v15 = vcombine.high %v123_v13, %v127_v14  ;;  %317 = vmatprep.subr.bf16.mxu1 %v2971_v10  ;;  %v2960_v19 = vcombine.low %v122_v8, %v126_v9  ;;  %v120_v20 = vld [vmem:[#allocation6] sm:$0xff]  ;;  %v137_v21 = vld [vmem:[#allocation10 + $0x78] sm:$0xff]  ;;  %p3868_p11 = scmp.ne.s32.totalorder %s105_s5, %s3867_s25  ;;  %p3873_p13 = scmp.lt.s32.totalorder %s3867_s25, %s3867_s25 }
  0x43   :  { %277 = vmatpush1.bf16.msra.mxu0 %v2968_v7  ;;  %318 = vmatpush1.bf16.msra.mxu1 %v2970_v11  ;;  %v2962_v22 = vcombine.low %v123_v13, %v127_v14  ;;  %v2975_v24 = vcombine.high %v133_v18, %v137_v21  ;;  %v124_v25 = vld [vmem:[#allocation10 + $0x10] sm:$0xff]  ;;  %v121_v27 = vpack.c.bf16 %v120_v20, %v120_v20  ;;  %v125_v28 = vld [vmem:[#allocation10 + $0x18] sm:$0xff] }
  0x44   :  { %278 = vmatprep.subr.bf16.mxu0 %v2961_v12  ;;  %319 = vmatprep.subr.bf16.mxu1 %v2963_v15  ;;  %v128_v26 = vld [vmem:[#allocation10 + $0x30] sm:$0xff]  ;;  %v129_v29 = vld [vmem:[#allocation10 + $0x38] sm:$0xff]  ;;  %v2974_v31 = vcombine.low %v133_v18, %v137_v21  ;;  %p3874_p0 = por %p3873_p13, %p3872_p12 }
  0x45   :  { %v2965_v32 = vcombine.high %v124_v25, %v128_v26  ;;  %v2967_v33 = vcombine.high %v125_v28, %v129_v29  ;;  %v2964_v34 = vcombine.low %v124_v25, %v128_v26  ;;  %v2966_v35 = vcombine.low %v125_v28, %v129_v29 }
  0x46   :  { %p3875_p1 = pnand %p3874_p0, %p3868_p11 }
  0x47   :  { %279 = vmatpush1.bf16.msra.mxu0 %v2960_v19  ;;  %320 = vmatpush1.bf16.msra.mxu1 %v2962_v22 }
  0x48   :  { %358 = vmatprep.subr.bf16.mxu0 %v2973_v23  ;;  %399 = vmatprep.subr.bf16.mxu1 %v2975_v24 }
  0x4a   :  { %2976 = vmatmul.mubr.msk.bf16.vlgmr.msra.gmra.mxu0 %vm260_vm0, %v121_v27  ;;  %2977 = vmatmul.mubr.msk.bf16.vlgmr.msra.gmra.mxu1 %vm260_vm0, %v121_v27 }
  0x4b   :  { %359 = vmatpush1.bf16.msra.mxu0 %v2972_v30  ;;  %400 = vmatpush1.bf16.msra.mxu1 %v2974_v31 }
  0x4c   :  { %360 = vmatprep.subr.bf16.mxu0 %v2965_v32  ;;  %401 = vmatprep.subr.bf16.mxu1 %v2967_v33 }
  0x4d   :  { %378 = vmatprep.mubr.bf16.mxu0 %v3916_v1  ;;  %419 = vmatprep.mubr.bf16.mxu1 %v3916_v1 }
  0x4f   :  { %361 = vmatpush1.bf16.msra.mxu0 %v2964_v34  ;;  %402 = vmatpush1.bf16.msra.mxu1 %v2966_v35 }
  0x52   :  { %2978 = vmatmul.mubr.msk.bf16.vlgmr.msra.gmra.mxu0 %vm260_vm0, %v121_v27  ;;  %2979 = vmatmul.mubr.msk.bf16.vlgmr.msra.gmra.mxu1 %vm260_vm0, %v121_v27 }
  0x53   :  { %3878 = shalt.err (!%p3875_p1)  }
  0x54   :  { %107 = dma.hbm_to_vmem [thread:$0]  %s4221_s4, 32768, %s105_s5, [#allocation4] }
  0x55   :  { %s3887_s27 = scalar_lea.vmem %s117_s24, 4096  ;;  %p3892_p3 = scmp.lt.s32.totalorder %s117_s24, %s117_s24 }
  0x56   :  { %p3888_p2 = scmp.ne.s32.totalorder %s117_s24, %s3887_s27  ;;  %p3893_p4 = scmp.lt.s32.totalorder %s3887_s27, %s3887_s27 }
  0x58   :  { %p3894_p5 = por %p3893_p4, %p3892_p3 }
  0x5a   :  { %p3895_p6 = pnand %p3894_p5, %p3888_p2 }
  0x5c   :  { %3898 = shalt.err (!%p3895_p6)  }
  0x5d   :  { %119 = dma.hbm_to_vmem [thread:$0]  %s4224_s7, 4096, %s117_s24, [#allocation4 + $0x1]  ;;  %v140_v36 = vlaneseq  ;;  %v138_v39 = vld [vmem:[#allocation11] sm:$0xff] }
  0x5f   :  { %v141_v37 = vshrl.u32 %v140_v36, 7 }
  0x61   :  { %v4018_v38 = vsub.s32 0, %v141_v37  ;;  %v4020_v40 = vsub.s32 2, %v141_v37  ;;  %v4022_v41 = vsub.s32 1, %v141_v37  ;;  %v4024_v42 = vsub.s32 3, %v141_v37 }
  0x62   :  { %v4030_v50 = vsub.s32 4, %v141_v37  ;;  %v4032_v53 = vsub.s32 6, %v141_v37  ;;  %v4034_v57 = vsub.s32 5, %v141_v37  ;;  %v4036_v61 = vsub.s32 7, %v141_v37 }
  0x63   :  { %v143_v43 = vrot.slane %v138_v39, %v4018_v38  ;;  %v151_v44 = vrot.slane %v138_v39, %v4020_v40  ;;  %v147_v45 = vrot.slane %v138_v39, %v4022_v41  ;;  %v155_v47 = vrot.slane %v138_v39, %v4024_v42 }
  0x64   :  { %v159_v2 = vrot.slane %v138_v39, %v4030_v50  ;;  %v167_v6 = vrot.slane %v138_v39, %v4032_v53  ;;  %v163_v9 = vrot.slane %v138_v39, %v4034_v57  ;;  %v171_v12 = vrot.slane %v138_v39, %v4036_v61 }
 0x10a   :  { %v298_v46 = vpop.f32.mrf.mxu0  ;;  %v339_v49 = vpop.f32.mrf.mxu1 }
 0x10b   :  { %v299_v48 = vadd.f32 %v298_v46, %v143_v43  ;;  %v340_v51 = vadd.f32 %v339_v49, %v151_v44 }
 0x10c   :  { %v300_v52 = vpop.f32.mrf.mxu0  ;;  %v341_v56 = vpop.f32.mrf.mxu1 }
 0x10d   :  { %v428_v54 = vmax.f32 %v299_v48, 0.0  ;;  %v301_v55 = vadd.f32 %v300_v52, %v147_v45  ;;  %v430_v58 = vmax.f32 %v340_v51, 0.0  ;;  %v342_v59 = vadd.f32 %v341_v56, %v155_v47 }
 0x10e   :  { %v302_v60 = vpop.f32.mrf.mxu0  ;;  %v343_v0 = vpop.f32.mrf.mxu1 }
 0x10f   :  { %v4038_v62 = vpack.c.bf16 %v428_v54, %v428_v54  ;;  %v429_v63 = vmax.f32 %v301_v55, 0.0  ;;  %v4041_v3 = vpack.c.bf16 %v430_v58, %v430_v58  ;;  %v431_v4 = vmax.f32 %v342_v59, 0.0 }
 0x110   :  { %v303_v5 = vpop.f32.mrf.mxu0  ;;  %v344_v8 = vpop.f32.mrf.mxu1 }
 0x111   :  { %v4044_v7 = vpack.c.bf16 %v429_v63, %v429_v63  ;;  %v4047_v10 = vpack.c.bf16 %v431_v4, %v431_v4 }
 0x112   :  { %v380_v11 = vpop.f32.mrf.mxu0  ;;  %v421_v14 = vpop.f32.mrf.mxu1 }
 0x113   :  { %v381_v13 = vadd.f32 %v380_v11, %v159_v2  ;;  %v422_v15 = vadd.f32 %v421_v14, %v167_v6 }
 0x114   :  { %v382_v16 = vpop.f32.mrf.mxu0  ;;  %v423_v19 = vpop.f32.mrf.mxu1 }
 0x115   :  { %v432_v17 = vmax.f32 %v381_v13, 0.0  ;;  %v383_v18 = vadd.f32 %v382_v16, %v163_v9  ;;  %v434_v20 = vmax.f32 %v422_v15, 0.0  ;;  %v424_v21 = vadd.f32 %v423_v19, %v171_v12 }
 0x116   :  { %v384_v22 = vpop.f32.mrf.mxu0  ;;  %v425_v25 = vpop.f32.mrf.mxu1 }
 0x117   :  { %v4050_v23 = vpack.c.bf16 %v432_v17, %v432_v17  ;;  %v433_v24 = vmax.f32 %v383_v18, 0.0  ;;  %v4052_v26 = vpack.c.bf16 %v434_v20, %v434_v20  ;;  %v435_v27 = vmax.f32 %v424_v21, 0.0 }
 0x118   :  { %v385_v28 = vpop.f32.mrf.mxu0  ;;  %v426_v30 = vpop.f32.mrf.mxu1 }
 0x119   :  { %v4054_v29 = vpack.c.bf16 %v433_v24, %v433_v24  ;;  %v4056_v31 = vpack.c.bf16 %v435_v27, %v435_v27 }
 0x11a   :  { %3905 = dma.done.wait [#allocation4], 32768 }
 0x11b   :  { %3906 = vsyncadd [#allocation4], 4294934528 }
 0x11c   :  { %3907 = dma.done.wait [#allocation4 + $0x1], 4096 }
 0x11d   :  { %3908 = vsyncadd [#allocation4 + $0x1], 4294963200  ;;  %2050 = vmatprep.mubr.bf16.mxu0 %v4044_v7  ;;  %2091 = vmatprep.mubr.bf16.mxu1 %v4047_v10  ;;  %v3343_v32 = vld [vmem:[#allocation2 + $0xe4] ss:$16 sps:$4 sm:$0xff]   ;;  %v3347_v34 = vld [vmem:[#allocation2 + $0xe0] ss:$16 sps:$4 sm:$0xff]  }
 0x11e   :  { %3334 = vset.pattern.permute.xlu0 %v3916_v1  ;;  %v3345_v33 = vld [vmem:[#allocation2 + $0x2e4] ss:$16 sps:$4 sm:$0xff]   ;;  %2018 = vmatprep.subr.bf16.mxu0 %v3343_v32  ;;  %v3348_v35 = vld [vmem:[#allocation2 + $0x2e0] ss:$16 sps:$4 sm:$0xff]   ;;  %vm2938_vm1 = vcmask 7168  }
 0x11f   :  { %2059 = vmatprep.subr.bf16.mxu1 %v3345_v33  ;;  %v3349_v36 = vld [vmem:[#allocation2 + $0xc4] ss:$16 sps:$4 sm:$0xff]   ;;  %2019 = vmatpush1.bf16.msra.mxu0 %v3347_v34  ;;  %v3353_v39 = vld [vmem:[#allocation2 + $0xc0] ss:$16 sps:$4 sm:$0xff]  }
 0x120   :  { %2060 = vmatpush1.bf16.msra.mxu1 %v3348_v35  ;;  %v3351_v37 = vld [vmem:[#allocation2 + $0x2c4] ss:$16 sps:$4 sm:$0xff]   ;;  %2020 = vmatprep.subr.bf16.mxu0 %v3349_v36  ;;  %v3354_v43 = vld [vmem:[#allocation2 + $0x2c0] ss:$16 sps:$4 sm:$0xff]  }
 0x121   :  { %2061 = vmatprep.subr.bf16.mxu1 %v3351_v37  ;;  %v3355_v44 = vld [vmem:[#allocation2 + $0xa4] ss:$16 sps:$4 sm:$0xff]   ;;  %v3359_v46 = vld [vmem:[#allocation2 + $0xa0] ss:$16 sps:$4 sm:$0xff]  }
 0x122   :  { %v3357_v45 = vld [vmem:[#allocation2 + $0x2a4] ss:$16 sps:$4 sm:$0xff]   ;;  %v3360_v47 = vld [vmem:[#allocation2 + $0x2a0] ss:$16 sps:$4 sm:$0xff]  }
 0x123   :  { %2021 = vmatpush1.bf16.msra.mxu0 %v3353_v39  ;;  %v3361_v1 = vld [vmem:[#allocation2 + $0x84] ss:$16 sps:$4 sm:$0xff]   ;;  %v3365_v49 = vld [vmem:[#allocation2 + $0x80] ss:$16 sps:$4 sm:$0xff]  }
 0x124   :  { %2062 = vmatpush1.bf16.msra.mxu1 %v3354_v43  ;;  %2022 = vmatprep.subr.bf16.mxu0 %v3355_v44  ;;  %v3363_v48 = vld [vmem:[#allocation2 + $0x284] ss:$16 sps:$4 sm:$0xff]   ;;  %v3366_v51 = vld [vmem:[#allocation2 + $0x280] ss:$16 sps:$4 sm:$0xff]  }
 0x125   :  { %2063 = vmatprep.subr.bf16.mxu1 %v3357_v45  ;;  %v3367_v52 = vld [vmem:[#allocation2 + $0x64] ss:$16 sps:$4 sm:$0xff]   ;;  %v3371_v55 = vld [vmem:[#allocation2 + $0x60] ss:$16 sps:$4 sm:$0xff]  }
 0x126   :  { %v3369_v54 = vld [vmem:[#allocation2 + $0x264] ss:$16 sps:$4 sm:$0xff]   ;;  %v3372_v56 = vld [vmem:[#allocation2 + $0x260] ss:$16 sps:$4 sm:$0xff]  }
 0x127   :  { %2023 = vmatpush1.bf16.msra.mxu0 %v3359_v46  ;;  %v3373_v58 = vld [vmem:[#allocation2 + $0x44] ss:$16 sps:$4 sm:$0xff]   ;;  %v3377_v60 = vld [vmem:[#allocation2 + $0x40] ss:$16 sps:$4 sm:$0xff]  }
 0x128   :  { %2064 = vmatpush1.bf16.msra.mxu1 %v3360_v47  ;;  %2024 = vmatprep.subr.bf16.mxu0 %v3361_v1  ;;  %v3375_v59 = vld [vmem:[#allocation2 + $0x244] ss:$16 sps:$4 sm:$0xff]   ;;  %v3378_v63 = vld [vmem:[#allocation2 + $0x240] ss:$16 sps:$4 sm:$0xff]  }
 0x129   :  { %2065 = vmatprep.subr.bf16.mxu1 %v3363_v48  ;;  %v3379_v0 = vld [vmem:[#allocation2 + $0x24] ss:$16 sps:$4 sm:$0xff]   ;;  %v3383_v4 = vld [vmem:[#allocation2 + $0x20] ss:$16 sps:$4 sm:$0xff]  }
 0x12a   :  { %v3381_v2 = vld [vmem:[#allocation2 + $0x224] ss:$16 sps:$4 sm:$0xff]   ;;  %v3384_v5 = vld [vmem:[#allocation2 + $0x220] ss:$16 sps:$4 sm:$0xff]  }
 0x12b   :  { %2025 = vmatpush1.bf16.msra.mxu0 %v3365_v49  ;;  %v3385_v6 = vld [vmem:[#allocation2 + $0x4] ss:$16 sps:$4 sm:$0xff]   ;;  %v3389_v9 = vld [vmem:[#allocation2] ss:$16 sps:$4 sm:$0xff]  }
 0x12c   :  { %2066 = vmatpush1.bf16.msra.mxu1 %v3366_v51  ;;  %2026 = vmatprep.subr.bf16.mxu0 %v3367_v52  ;;  %v3387_v8 = vld [vmem:[#allocation2 + $0x204] ss:$16 sps:$4 sm:$0xff]   ;;  %v3390_v11 = vld [vmem:[#allocation2 + $0x200] ss:$16 sps:$4 sm:$0xff]  }
 0x12d   :  { %2067 = vmatprep.subr.bf16.mxu1 %v3369_v54  ;;  %v3391_v12 = vld [vmem:[#allocation2 + $0x1e4] ss:$16 sps:$4 sm:$0xff]   ;;  %v3395_v14 = vld [vmem:[#allocation2 + $0x1e0] ss:$16 sps:$4 sm:$0xff]  }
 0x12e   :  { %v3393_v13 = vld [vmem:[#allocation2 + $0x3e4] ss:$16 sps:$4 sm:$0xff]   ;;  %v3396_v15 = vld [vmem:[#allocation2 + $0x3e0] ss:$16 sps:$4 sm:$0xff]  }
 0x12f   :  { %2027 = vmatpush1.bf16.msra.mxu0 %v3371_v55  ;;  %v3397_v16 = vld [vmem:[#allocation2 + $0x1c4] ss:$16 sps:$4 sm:$0xff]   ;;  %v3401_v18 = vld [vmem:[#allocation2 + $0x1c0] ss:$16 sps:$4 sm:$0xff]  }
 0x130   :  { %2068 = vmatpush1.bf16.msra.mxu1 %v3372_v56  ;;  %2028 = vmatprep.subr.bf16.mxu0 %v3373_v58  ;;  %v3399_v17 = vld [vmem:[#allocation2 + $0x3c4] ss:$16 sps:$4 sm:$0xff]   ;;  %v3402_v19 = vld [vmem:[#allocation2 + $0x3c0] ss:$16 sps:$4 sm:$0xff]  }
 0x131   :  { %2069 = vmatprep.subr.bf16.mxu1 %v3375_v59  ;;  %v3403_v20 = vld [vmem:[#allocation2 + $0x1a4] ss:$16 sps:$4 sm:$0xff]   ;;  %v3407_v22 = vld [vmem:[#allocation2 + $0x1a0] ss:$16 sps:$4 sm:$0xff]  }
 0x132   :  { %v3405_v21 = vld [vmem:[#allocation2 + $0x3a4] ss:$16 sps:$4 sm:$0xff]   ;;  %v3408_v24 = vld [vmem:[#allocation2 + $0x3a0] ss:$16 sps:$4 sm:$0xff]  }
 0x133   :  { %2029 = vmatpush1.bf16.msra.mxu0 %v3377_v60  ;;  %v3409_v25 = vld [vmem:[#allocation2 + $0x184] ss:$16 sps:$4 sm:$0xff]   ;;  %v3413_v28 = vld [vmem:[#allocation2 + $0x180] ss:$16 sps:$4 sm:$0xff]   ;;  %v3919_v60 = vmov 2  }
 0x134   :  { %2070 = vmatpush1.bf16.msra.mxu1 %v3378_v63  ;;  %2030 = vmatprep.subr.bf16.mxu0 %v3379_v0  ;;  %v3411_v27 = vld [vmem:[#allocation2 + $0x384] ss:$16 sps:$4 sm:$0xff]   ;;  %v3414_v30 = vld [vmem:[#allocation2 + $0x380] ss:$16 sps:$4 sm:$0xff]  }
 0x135   :  { %2071 = vmatprep.subr.bf16.mxu1 %v3381_v2  ;;  %v3415_v32 = vld [vmem:[#allocation2 + $0x164] ss:$16 sps:$4 sm:$0xff]   ;;  %v3419_v34 = vld [vmem:[#allocation2 + $0x160] ss:$16 sps:$4 sm:$0xff]   ;;  %3336 = vset.pattern.permute.xlu1 %v3919_v60 }
 0x136   :  { %v3417_v33 = vld [vmem:[#allocation2 + $0x364] ss:$16 sps:$4 sm:$0xff]   ;;  %v3420_v35 = vld [vmem:[#allocation2 + $0x360] ss:$16 sps:$4 sm:$0xff]  }
 0x137   :  { %2031 = vmatpush1.bf16.msra.mxu0 %v3383_v4  ;;  %v3421_v36 = vld [vmem:[#allocation2 + $0x144] ss:$16 sps:$4 sm:$0xff]   ;;  %v3425_v39 = vld [vmem:[#allocation2 + $0x140] ss:$16 sps:$4 sm:$0xff]  }
 0x138   :  { %2072 = vmatpush1.bf16.msra.mxu1 %v3384_v5  ;;  %2032 = vmatprep.subr.bf16.mxu0 %v3385_v6  ;;  %v3423_v37 = vld [vmem:[#allocation2 + $0x344] ss:$16 sps:$4 sm:$0xff]   ;;  %v3426_v43 = vld [vmem:[#allocation2 + $0x340] ss:$16 sps:$4 sm:$0xff]  }
 0x139   :  { %2073 = vmatprep.subr.bf16.mxu1 %v3387_v8  ;;  %v3427_v44 = vld [vmem:[#allocation2 + $0x124] ss:$16 sps:$4 sm:$0xff]   ;;  %v3431_v46 = vld [vmem:[#allocation2 + $0x120] ss:$16 sps:$4 sm:$0xff]  }
 0x13a   :  { %v3429_v45 = vld [vmem:[#allocation2 + $0x324] ss:$16 sps:$4 sm:$0xff]   ;;  %v3432_v47 = vld [vmem:[#allocation2 + $0x320] ss:$16 sps:$4 sm:$0xff]  }
 0x13b   :  { %2033 = vmatpush1.bf16.msra.mxu0 %v3389_v9  ;;  %v3433_v1 = vld [vmem:[#allocation2 + $0x104] ss:$16 sps:$4 sm:$0xff]   ;;  %v3437_v49 = vld [vmem:[#allocation2 + $0x100] ss:$16 sps:$4 sm:$0xff]  }
 0x13c   :  { %2074 = vmatpush1.bf16.msra.mxu1 %v3390_v11  ;;  %2034 = vmatprep.subr.bf16.mxu0 %v3391_v12  ;;  %v3435_v48 = vld [vmem:[#allocation2 + $0x304] ss:$16 sps:$4 sm:$0xff]   ;;  %v3438_v51 = vld [vmem:[#allocation2 + $0x300] ss:$16 sps:$4 sm:$0xff]  }
 0x13d   :  { %2075 = vmatprep.subr.bf16.mxu1 %v3393_v13  ;;  %v3441_v52 = vld [vmem:[#allocation2 + $0x4e4] ss:$16 sps:$4 sm:$0xff]   ;;  %v3439_v55 = vld [vmem:[#allocation2 + $0x4e0] ss:$16 sps:$4 sm:$0xff]  }
 0x13e   :  { %v3444_v54 = vld [vmem:[#allocation2 + $0x6e4] ss:$16 sps:$4 sm:$0xff]   ;;  %v3442_v56 = vld [vmem:[#allocation2 + $0x6e0] ss:$16 sps:$4 sm:$0xff]  }
 0x13f   :  { %2035 = vmatpush2.bf16.msra.mxu0 %v3395_v14  ;;  %v3447_v58 = vld [vmem:[#allocation2 + $0x4c4] ss:$16 sps:$4 sm:$0xff]   ;;  %v3445_v63 = vld [vmem:[#allocation2 + $0x4c0] ss:$16 sps:$4 sm:$0xff]  }
 0x140   :  { %2076 = vmatpush2.bf16.msra.mxu1 %v3396_v15  ;;  %2036 = vmatprep.subr.bf16.mxu0 %v3397_v16  ;;  %v3450_v59 = vld [vmem:[#allocation2 + $0x6c4] ss:$16 sps:$4 sm:$0xff]   ;;  %v3448_v0 = vld [vmem:[#allocation2 + $0x6c0] ss:$16 sps:$4 sm:$0xff]  }
 0x141   :  { %2077 = vmatprep.subr.bf16.mxu1 %v3399_v17  ;;  %v3453_v2 = vld [vmem:[#allocation2 + $0x4a4] ss:$16 sps:$4 sm:$0xff]   ;;  %v3451_v5 = vld [vmem:[#allocation2 + $0x4a0] ss:$16 sps:$4 sm:$0xff]  }
 0x142   :  { %v3456_v4 = vld [vmem:[#allocation2 + $0x6a4] ss:$16 sps:$4 sm:$0xff]   ;;  %v3454_v6 = vld [vmem:[#allocation2 + $0x6a0] ss:$16 sps:$4 sm:$0xff]  }
 0x143   :  { %2037 = vmatpush2.bf16.msra.mxu0 %v3401_v18  ;;  %v3459_v8 = vld [vmem:[#allocation2 + $0x484] ss:$16 sps:$4 sm:$0xff]   ;;  %v3457_v11 = vld [vmem:[#allocation2 + $0x480] ss:$16 sps:$4 sm:$0xff]  }
 0x144   :  { %2078 = vmatpush2.bf16.msra.mxu1 %v3402_v19  ;;  %2038 = vmatprep.subr.bf16.mxu0 %v3403_v20  ;;  %v3462_v9 = vld [vmem:[#allocation2 + $0x684] ss:$16 sps:$4 sm:$0xff]   ;;  %v3460_v12 = vld [vmem:[#allocation2 + $0x680] ss:$16 sps:$4 sm:$0xff]  }
 0x145   :  { %2079 = vmatprep.subr.bf16.mxu1 %v3405_v21  ;;  %v3465_v13 = vld [vmem:[#allocation2 + $0x464] ss:$16 sps:$4 sm:$0xff]   ;;  %v3463_v15 = vld [vmem:[#allocation2 + $0x460] ss:$16 sps:$4 sm:$0xff]  }
 0x146   :  { %v3468_v14 = vld [vmem:[#allocation2 + $0x664] ss:$16 sps:$4 sm:$0xff]   ;;  %v3466_v16 = vld [vmem:[#allocation2 + $0x660] ss:$16 sps:$4 sm:$0xff]  }
 0x147   :  { %2039 = vmatpush2.bf16.msra.mxu0 %v3407_v22  ;;  %v3471_v17 = vld [vmem:[#allocation2 + $0x444] ss:$16 sps:$4 sm:$0xff]   ;;  %v3469_v19 = vld [vmem:[#allocation2 + $0x440] ss:$16 sps:$4 sm:$0xff]  }
 0x148   :  { %2080 = vmatpush2.bf16.msra.mxu1 %v3408_v24  ;;  %2040 = vmatprep.subr.bf16.mxu0 %v3409_v25  ;;  %v3474_v18 = vld [vmem:[#allocation2 + $0x644] ss:$16 sps:$4 sm:$0xff]   ;;  %v3472_v20 = vld [vmem:[#allocation2 + $0x640] ss:$16 sps:$4 sm:$0xff]  }
 0x149   :  { %2081 = vmatprep.subr.bf16.mxu1 %v3411_v27  ;;  %v3477_v21 = vld [vmem:[#allocation2 + $0x424] ss:$16 sps:$4 sm:$0xff]   ;;  %v3475_v24 = vld [vmem:[#allocation2 + $0x420] ss:$16 sps:$4 sm:$0xff]  }
 0x14a   :  { %v3480_v22 = vld [vmem:[#allocation2 + $0x624] ss:$16 sps:$4 sm:$0xff]   ;;  %v3478_v25 = vld [vmem:[#allocation2 + $0x620] ss:$16 sps:$4 sm:$0xff]  }
 0x14b   :  { %2041 = vmatpush2.bf16.msra.mxu0 %v3413_v28  ;;  %v4065_v27 = vld [vmem:[#allocation8] sm:$0xff]  ;;  %v3483_v28 = vld [vmem:[#allocation2 + $0x404] ss:$16 sps:$4 sm:$0xff]  }
 0x14c   :  { %2082 = vmatpush2.bf16.msra.mxu1 %v3414_v30  ;;  %2042 = vmatprep.subr.bf16.mxu0 %v3415_v32  ;;  %v3486_v30 = vld [vmem:[#allocation2 + $0x604] ss:$16 sps:$4 sm:$0xff]   ;;  %v3481_v32 = vld [vmem:[#allocation2 + $0x400] ss:$16 sps:$4 sm:$0xff]  }
 0x14d   :  { %2083 = vmatprep.subr.bf16.mxu1 %v3417_v33  ;;  %715 = vperm.xlu0 %3334, %v4065_v27   ;;  %v3484_v33 = vld [vmem:[#allocation2 + $0x600] ss:$16 sps:$4 sm:$0xff]  }
 0x14e   :  { %2375 = vperm.xlu1 %3336, %v4065_v27   ;;  %v3505_v60 = vld [vmem:[#allocation2 + $0x580] ss:$16 sps:$4 sm:$0xff]  }
 0x14f   :  { %2043 = vmatpush2.bf16.msra.mxu0 %v3419_v34  ;;  %v3489_v34 = vld [vmem:[#allocation2 + $0x5e4] ss:$16 sps:$4 sm:$0xff]  }
 0x150   :  { %2084 = vmatpush2.bf16.msra.mxu1 %v3420_v35  ;;  %2044 = vmatprep.subr.bf16.mxu0 %v3421_v36  ;;  %v3492_v35 = vld [vmem:[#allocation2 + $0x7e4] ss:$16 sps:$4 sm:$0xff]   ;;  %v3920_v36 = vmov 3  }
 0x151   :  { %2085 = vmatprep.subr.bf16.mxu1 %v3423_v37  ;;  %v3921_v37 = vmov 1  }
 0x152   :  { %3337 = vset.pattern.permute.xlu1 %v3920_v36  ;;  %3335 = vset.pattern.permute.xlu0 %v3921_v37  ;;  %v3555_v36 = vld [vmem:[#allocation2 + $0x8c] ss:$16 sps:$4 sm:$0xff]  }
 0x153   :  { %2045 = vmatpush2.bf16.msra.mxu0 %v3425_v39  ;;  %v3487_v39 = vld [vmem:[#allocation2 + $0x5e0] ss:$16 sps:$4 sm:$0xff]   ;;  %2403 = vperm.xlu1 %3337, %v4065_v27   ;;  %v3558_v37 = vld [vmem:[#allocation2 + $0x28c] ss:$16 sps:$4 sm:$0xff]  }
 0x154   :  { %2086 = vmatpush2.bf16.msra.mxu1 %v3426_v43  ;;  %2046 = vmatprep.subr.bf16.mxu0 %v3427_v44  ;;  %v3490_v43 = vld [vmem:[#allocation2 + $0x7e0] ss:$16 sps:$4 sm:$0xff]   ;;  %v3495_v44 = vld [vmem:[#allocation2 + $0x5c4] ss:$16 sps:$4 sm:$0xff]  }
 0x155   :  { %2087 = vmatprep.subr.bf16.mxu1 %v3429_v45  ;;  %2347 = vperm.xlu0 %3335, %v4065_v27   ;;  %v3498_v45 = vld [vmem:[#allocation2 + $0x7c4] ss:$16 sps:$4 sm:$0xff]  }
 0x157   :  { %2047 = vmatpush2.bf16.msra.mxu0 %v3431_v46  ;;  %v3493_v46 = vld [vmem:[#allocation2 + $0x5c0] ss:$16 sps:$4 sm:$0xff]  }
 0x158   :  { %2088 = vmatpush2.bf16.msra.mxu1 %v3432_v47  ;;  %2048 = vmatprep.subr.bf16.mxu0 %v3433_v1  ;;  %v3922_v47 = vmov 4   ;;  %v3923_v1 = vmov 5  }
 0x159   :  { %2089 = vmatprep.subr.bf16.mxu1 %v3435_v48  ;;  %3338 = vset.pattern.permute.xlu1 %v3922_v47  ;;  %v3496_v48 = vld [vmem:[#allocation2 + $0x7c0] ss:$16 sps:$4 sm:$0xff]   ;;  %v3570_v47 = vld [vmem:[#allocation2 + $0x24c] ss:$16 sps:$4 sm:$0xff]  }
 0x15a   :  { %3339 = vset.pattern.permute.xlu0 %v3923_v1  ;;  %2431 = vperm.xlu1 %3338, %v4065_v27   ;;  %v3565_v1 = vld [vmem:[#allocation2 + $0x48] ss:$16 sps:$4 sm:$0xff]  }
 0x15b   :  { %2049 = vmatpush2.bf16.msra.mxu0 %v3437_v49  ;;  %v3501_v49 = vld [vmem:[#allocation2 + $0x5a4] ss:$16 sps:$4 sm:$0xff]   ;;  %2459 = vperm.xlu0 %3339, %v4065_v27  }
 0x15c   :  { %2090 = vmatpush2.bf16.msra.mxu1 %v3438_v51  ;;  %2100 = vmatprep.subr.bf16.mxu0 %v3441_v52  ;;  %v3504_v51 = vld [vmem:[#allocation2 + $0x7a4] ss:$16 sps:$4 sm:$0xff]   ;;  %v3499_v52 = vld [vmem:[#allocation2 + $0x5a0] ss:$16 sps:$4 sm:$0xff]  }
 0x15d   :  { %2141 = vmatprep.subr.bf16.mxu1 %v3444_v54  ;;  %v3502_v54 = vld [vmem:[#allocation2 + $0x7a0] ss:$16 sps:$4 sm:$0xff]  }
 0x15e   :  { %2051 = vmatmul.mubr.bf16.vlgmr.msra.gmra.mxu0 %v4038_v62 }
 0x15f   :  { %2092 = vmatmul.mubr.bf16.vlgmr.msra.gmra.mxu1 %v4041_v3  ;;  %2101 = vmatpush1.bf16.msra.mxu0 %v3439_v55  ;;  %v3507_v55 = vld [vmem:[#allocation2 + $0x584] ss:$16 sps:$4 sm:$0xff]  }
 0x160   :  { %2142 = vmatpush1.bf16.msra.mxu1 %v3442_v56  ;;  %2102 = vmatprep.subr.bf16.mxu0 %v3447_v58  ;;  %v3510_v56 = vld [vmem:[#allocation2 + $0x784] ss:$16 sps:$4 sm:$0xff]   ;;  %v3924_v58 = vmov 6  }
 0x161   :  { %2143 = vmatprep.subr.bf16.mxu1 %v3450_v59  ;;  %2132 = vmatprep.mubr.bf16.mxu0 %v4054_v29  ;;  %v3925_v59 = vmov 7  }
 0x162   :  { %2173 = vmatprep.mubr.bf16.mxu1 %v4056_v31  ;;  %3340 = vset.pattern.permute.xlu1 %v3924_v58  ;;  %v3577_v58 = vld [vmem:[#allocation2 + $0x8] ss:$16 sps:$4 sm:$0xff]  }
 0x163   :  { %2103 = vmatpush1.bf16.msra.mxu0 %v3445_v63  ;;  %3342 = vset.pattern.permute.xlu0 %v3925_v59  ;;  %v3508_v63 = vld [vmem:[#allocation2 + $0x780] ss:$16 sps:$4 sm:$0xff]  }
 0x164   :  { %2144 = vmatpush1.bf16.msra.mxu1 %v3448_v0  ;;  %2104 = vmatprep.subr.bf16.mxu0 %v3453_v2  ;;  %v3513_v0 = vld [vmem:[#allocation2 + $0x564] ss:$16 sps:$4 sm:$0xff]  }
 0x165   :  { %2145 = vmatprep.subr.bf16.mxu1 %v3456_v4  ;;  %2487 = vperm.xlu1 %3340, %v4065_v27   ;;  %v3516_v2 = vld [vmem:[#allocation2 + $0x764] ss:$16 sps:$4 sm:$0xff]   ;;  %v3511_v4 = vld [vmem:[#allocation2 + $0x560] ss:$16 sps:$4 sm:$0xff]  }
 0x167   :  { %2105 = vmatpush1.bf16.msra.mxu0 %v3451_v5  ;;  %v3514_v5 = vld [vmem:[#allocation2 + $0x760] ss:$16 sps:$4 sm:$0xff]  }
 0x168   :  { %2146 = vmatpush1.bf16.msra.mxu1 %v3454_v6  ;;  %2106 = vmatprep.subr.bf16.mxu0 %v3459_v8  ;;  %v3519_v6 = vld [vmem:[#allocation2 + $0x544] ss:$16 sps:$4 sm:$0xff]  }
 0x169   :  { %2147 = vmatprep.subr.bf16.mxu1 %v3462_v9  ;;  %3341 = vset.pattern.permute.xlu1 %v3925_v59  ;;  %v3522_v8 = vld [vmem:[#allocation2 + $0x744] ss:$16 sps:$4 sm:$0xff]   ;;  %v3517_v9 = vld [vmem:[#allocation2 + $0x540] ss:$16 sps:$4 sm:$0xff]   ;;  %v3580_v59 = vld [vmem:[#allocation2 + $0x208] ss:$16 sps:$4 sm:$0xff]  }
 0x16a   :  { %2515 = vperm.xlu1 %3341, %v4065_v27   ;;  %v3546_v27 = vld [vmem:[#allocation2 + $0x2cc] ss:$16 sps:$4 sm:$0xff]  }
 0x16b   :  { %2107 = vmatpush1.bf16.msra.mxu0 %v3457_v11  ;;  %v3520_v11 = vld [vmem:[#allocation2 + $0x740] ss:$16 sps:$4 sm:$0xff]  }
 0x16c   :  { %2148 = vmatpush1.bf16.msra.mxu1 %v3460_v12  ;;  %2108 = vmatprep.subr.bf16.mxu0 %v3465_v13  ;;  %v3525_v12 = vld [vmem:[#allocation2 + $0x524] ss:$16 sps:$4 sm:$0xff]  }
 0x16d   :  { %2149 = vmatprep.subr.bf16.mxu1 %v3468_v14  ;;  %v3528_v13 = vld [vmem:[#allocation2 + $0x724] ss:$16 sps:$4 sm:$0xff]   ;;  %v3523_v14 = vld [vmem:[#allocation2 + $0x520] ss:$16 sps:$4 sm:$0xff]  }
 0x16f   :  { %2109 = vmatpush1.bf16.msra.mxu0 %v3463_v15  ;;  %v3526_v15 = vld [vmem:[#allocation2 + $0x720] ss:$16 sps:$4 sm:$0xff]  }
 0x170   :  { %2150 = vmatpush1.bf16.msra.mxu1 %v3466_v16  ;;  %2110 = vmatprep.subr.bf16.mxu0 %v3471_v17  ;;  %v3531_v16 = vld [vmem:[#allocation2 + $0x504] ss:$16 sps:$4 sm:$0xff]  }
 0x171   :  { %2151 = vmatprep.subr.bf16.mxu1 %v3474_v18  ;;  %v3534_v17 = vld [vmem:[#allocation2 + $0x704] ss:$16 sps:$4 sm:$0xff]   ;;  %v3529_v18 = vld [vmem:[#allocation2 + $0x500] ss:$16 sps:$4 sm:$0xff]  }
 0x173   :  { %2111 = vmatpush1.bf16.msra.mxu0 %v3469_v19  ;;  %v3532_v19 = vld [vmem:[#allocation2 + $0x700] ss:$16 sps:$4 sm:$0xff]  }
 0x174   :  { %2152 = vmatpush1.bf16.msra.mxu1 %v3472_v20  ;;  %2112 = vmatprep.subr.bf16.mxu0 %v3477_v21  ;;  %v3537_v20 = vld [vmem:[#allocation2 + $0xec] ss:$16 sps:$4 sm:$0xff]  }
 0x175   :  { %2153 = vmatprep.subr.bf16.mxu1 %v3480_v22  ;;  %v3540_v21 = vld [vmem:[#allocation2 + $0x2ec] ss:$16 sps:$4 sm:$0xff]   ;;  %v3535_v22 = vld [vmem:[#allocation2 + $0xe8] ss:$16 sps:$4 sm:$0xff]  }
 0x177   :  { %2113 = vmatpush1.bf16.msra.mxu0 %v3475_v24  ;;  %v3538_v24 = vld [vmem:[#allocation2 + $0x2e8] ss:$16 sps:$4 sm:$0xff]  }
 0x178   :  { %2154 = vmatpush1.bf16.msra.mxu1 %v3478_v25  ;;  %2114 = vmatprep.subr.bf16.mxu0 %v3483_v28  ;;  %v3543_v25 = vld [vmem:[#allocation2 + $0xcc] ss:$16 sps:$4 sm:$0xff]   ;;  %v3541_v28 = vld [vmem:[#allocation2 + $0xc8] ss:$16 sps:$4 sm:$0xff]  }
 0x179   :  { %2155 = vmatprep.subr.bf16.mxu1 %v3486_v30  ;;  %v3544_v30 = vld [vmem:[#allocation2 + $0x2c8] ss:$16 sps:$4 sm:$0xff]  }
 0x17b   :  { %2115 = vmatpush1.bf16.msra.mxu0 %v3481_v32  ;;  %v3549_v32 = vld [vmem:[#allocation2 + $0xac] ss:$16 sps:$4 sm:$0xff]  }
 0x17c   :  { %2156 = vmatpush1.bf16.msra.mxu1 %v3484_v33  ;;  %2116 = vmatprep.subr.bf16.mxu0 %v3489_v34  ;;  %v3552_v33 = vld [vmem:[#allocation2 + $0x2ac] ss:$16 sps:$4 sm:$0xff]   ;;  %v3547_v34 = vld [vmem:[#allocation2 + $0xa8] ss:$16 sps:$4 sm:$0xff]  }
 0x17d   :  { %2157 = vmatprep.subr.bf16.mxu1 %v3492_v35  ;;  %v3550_v35 = vld [vmem:[#allocation2 + $0x2a8] ss:$16 sps:$4 sm:$0xff]  }
 0x17f   :  { %2117 = vmatpush2.bf16.msra.mxu0 %v3487_v39  ;;  %v3553_v39 = vld [vmem:[#allocation2 + $0x88] ss:$16 sps:$4 sm:$0xff]  }
 0x180   :  { %2158 = vmatpush2.bf16.msra.mxu1 %v3490_v43  ;;  %2118 = vmatprep.subr.bf16.mxu0 %v3495_v44  ;;  %v3556_v43 = vld [vmem:[#allocation2 + $0x288] ss:$16 sps:$4 sm:$0xff]   ;;  %v3561_v44 = vld [vmem:[#allocation2 + $0x6c] ss:$16 sps:$4 sm:$0xff]  }
 0x181   :  { %2159 = vmatprep.subr.bf16.mxu1 %v3498_v45  ;;  %v3564_v45 = vld [vmem:[#allocation2 + $0x26c] ss:$16 sps:$4 sm:$0xff]  }
 0x183   :  { %2119 = vmatpush2.bf16.msra.mxu0 %v3493_v46  ;;  %v3559_v46 = vld [vmem:[#allocation2 + $0x68] ss:$16 sps:$4 sm:$0xff]  }
 0x184   :  { %2160 = vmatpush2.bf16.msra.mxu1 %v3496_v48  ;;  %2120 = vmatprep.subr.bf16.mxu0 %v3501_v49  ;;  %v3568_v48 = vld [vmem:[#allocation2 + $0x248] ss:$16 sps:$4 sm:$0xff]   ;;  %v3573_v49 = vld [vmem:[#allocation2 + $0x2c] ss:$16 sps:$4 sm:$0xff]  }
 0x185   :  { %2161 = vmatprep.subr.bf16.mxu1 %v3504_v51  ;;  %v3576_v51 = vld [vmem:[#allocation2 + $0x22c] ss:$16 sps:$4 sm:$0xff]  }
 0x187   :  { %2121 = vmatpush2.bf16.msra.mxu0 %v3499_v52  ;;  %v3571_v52 = vld [vmem:[#allocation2 + $0x28] ss:$16 sps:$4 sm:$0xff]  }
 0x188   :  { %2162 = vmatpush2.bf16.msra.mxu1 %v3502_v54  ;;  %2122 = vmatprep.subr.bf16.mxu0 %v3507_v55  ;;  %v3574_v54 = vld [vmem:[#allocation2 + $0x228] ss:$16 sps:$4 sm:$0xff]   ;;  %v3579_v55 = vld [vmem:[#allocation2 + $0xc] ss:$16 sps:$4 sm:$0xff]  }
 0x189   :  { %2163 = vmatprep.subr.bf16.mxu1 %v3510_v56  ;;  %v3582_v56 = vld [vmem:[#allocation2 + $0x20c] ss:$16 sps:$4 sm:$0xff]  }
 0x18b   :  { %2123 = vmatpush2.bf16.msra.mxu0 %v3505_v60  ;;  %v3585_v60 = vld [vmem:[#allocation2 + $0x1ec] ss:$16 sps:$4 sm:$0xff]  }
 0x18c   :  { %2164 = vmatpush2.bf16.msra.mxu1 %v3508_v63  ;;  %2124 = vmatprep.subr.bf16.mxu0 %v3513_v0  ;;  %v3588_v63 = vld [vmem:[#allocation2 + $0x3ec] ss:$16 sps:$4 sm:$0xff]   ;;  %v3583_v0 = vld [vmem:[#allocation2 + $0x1e8] ss:$16 sps:$4 sm:$0xff]  }
 0x18d   :  { %2165 = vmatprep.subr.bf16.mxu1 %v3516_v2  ;;  %v3586_v2 = vld [vmem:[#allocation2 + $0x3e8] ss:$16 sps:$4 sm:$0xff]  }
 0x18f   :  { %2125 = vmatpush2.bf16.msra.mxu0 %v3511_v4  ;;  %v3591_v4 = vld [vmem:[#allocation2 + $0x1cc] ss:$16 sps:$4 sm:$0xff]  }
 0x190   :  { %2166 = vmatpush2.bf16.msra.mxu1 %v3514_v5  ;;  %2126 = vmatprep.subr.bf16.mxu0 %v3519_v6  ;;  %v3594_v5 = vld [vmem:[#allocation2 + $0x3cc] ss:$16 sps:$4 sm:$0xff]   ;;  %v3589_v6 = vld [vmem:[#allocation2 + $0x1c8] ss:$16 sps:$4 sm:$0xff]  }
 0x191   :  { %2167 = vmatprep.subr.bf16.mxu1 %v3522_v8  ;;  %v3592_v8 = vld [vmem:[#allocation2 + $0x3c8] ss:$16 sps:$4 sm:$0xff]  }
 0x193   :  { %2127 = vmatpush2.bf16.msra.mxu0 %v3517_v9  ;;  %v3597_v9 = vld [vmem:[#allocation2 + $0x1ac] ss:$16 sps:$4 sm:$0xff]  }
 0x194   :  { %2168 = vmatpush2.bf16.msra.mxu1 %v3520_v11  ;;  %2128 = vmatprep.subr.bf16.mxu0 %v3525_v12  ;;  %v3600_v11 = vld [vmem:[#allocation2 + $0x3ac] ss:$16 sps:$4 sm:$0xff]   ;;  %v3595_v12 = vld [vmem:[#allocation2 + $0x1a8] ss:$16 sps:$4 sm:$0xff]  }
 0x195   :  { %2169 = vmatprep.subr.bf16.mxu1 %v3528_v13  ;;  %v3598_v13 = vld [vmem:[#allocation2 + $0x3a8] ss:$16 sps:$4 sm:$0xff]  }
 0x197   :  { %2129 = vmatpush2.bf16.msra.mxu0 %v3523_v14  ;;  %v3603_v14 = vld [vmem:[#allocation2 + $0x18c] ss:$16 sps:$4 sm:$0xff]  }
 0x198   :  { %2170 = vmatpush2.bf16.msra.mxu1 %v3526_v15  ;;  %2130 = vmatprep.subr.bf16.mxu0 %v3531_v16  ;;  %v3606_v15 = vld [vmem:[#allocation2 + $0x38c] ss:$16 sps:$4 sm:$0xff]   ;;  %v3601_v16 = vld [vmem:[#allocation2 + $0x188] ss:$16 sps:$4 sm:$0xff]  }
 0x199   :  { %2171 = vmatprep.subr.bf16.mxu1 %v3534_v17  ;;  %v3604_v17 = vld [vmem:[#allocation2 + $0x388] ss:$16 sps:$4 sm:$0xff]  }
 0x19b   :  { %2131 = vmatpush2.bf16.msra.mxu0 %v3529_v18  ;;  %v3609_v18 = vld [vmem:[#allocation2 + $0x16c] ss:$16 sps:$4 sm:$0xff]  }
 0x19c   :  { %2172 = vmatpush2.bf16.msra.mxu1 %v3532_v19  ;;  %2182 = vmatprep.subr.bf16.mxu0 %v3537_v20  ;;  %v3612_v19 = vld [vmem:[#allocation2 + $0x36c] ss:$16 sps:$4 sm:$0xff]   ;;  %v3607_v20 = vld [vmem:[#allocation2 + $0x168] ss:$16 sps:$4 sm:$0xff]  }
 0x19d   :  { %2223 = vmatprep.subr.bf16.mxu1 %v3540_v21  ;;  %v3610_v21 = vld [vmem:[#allocation2 + $0x368] ss:$16 sps:$4 sm:$0xff]  }
 0x19e   :  { %2133 = vmatmul.mubr.bf16.vlgmr.msra.gmra.mxu0 %v4050_v23 }
 0x19f   :  { %2174 = vmatmul.mubr.bf16.vlgmr.msra.gmra.mxu1 %v4052_v26  ;;  %2183 = vmatpush1.bf16.msra.mxu0 %v3535_v22  ;;  %v3615_v22 = vld [vmem:[#allocation2 + $0x14c] ss:$16 sps:$4 sm:$0xff]  }
 0x1a0   :  { %2224 = vmatpush1.bf16.msra.mxu1 %v3538_v24  ;;  %2184 = vmatprep.subr.bf16.mxu0 %v3543_v25  ;;  %v3618_v24 = vld [vmem:[#allocation2 + $0x34c] ss:$16 sps:$4 sm:$0xff]   ;;  %v3613_v25 = vld [vmem:[#allocation2 + $0x148] ss:$16 sps:$4 sm:$0xff]  }
 0x1a1   :  { %2225 = vmatprep.subr.bf16.mxu1 %v3546_v27  ;;  %2214 = vmatprep.mubr.bf16.mxu0 %v4044_v7  ;;  %v3562_v7 = vld [vmem:[#allocation2 + $0x268] ss:$16 sps:$4 sm:$0xff]  }
 0x1a2   :  { %2255 = vmatprep.mubr.bf16.mxu1 %v4047_v10  ;;  %v3567_v10 = vld [vmem:[#allocation2 + $0x4c] ss:$16 sps:$4 sm:$0xff]   ;;  %v3616_v27 = vld [vmem:[#allocation2 + $0x348] ss:$16 sps:$4 sm:$0xff]  }
 0x1a3   :  { %2185 = vmatpush1.bf16.msra.mxu0 %v3541_v28  ;;  %v3621_v28 = vld [vmem:[#allocation2 + $0x12c] ss:$16 sps:$4 sm:$0xff]  }
 0x1a4   :  { %2226 = vmatpush1.bf16.msra.mxu1 %v3544_v30  ;;  %2186 = vmatprep.subr.bf16.mxu0 %v3549_v32  ;;  %v3624_v30 = vld [vmem:[#allocation2 + $0x32c] ss:$16 sps:$4 sm:$0xff]   ;;  %v3619_v32 = vld [vmem:[#allocation2 + $0x128] ss:$16 sps:$4 sm:$0xff]  }
 0x1a5   :  { %2227 = vmatprep.subr.bf16.mxu1 %v3552_v33  ;;  %v3622_v33 = vld [vmem:[#allocation2 + $0x328] ss:$16 sps:$4 sm:$0xff]  }
 0x1a7   :  { %2187 = vmatpush1.bf16.msra.mxu0 %v3547_v34  ;;  %v3627_v34 = vld [vmem:[#allocation2 + $0x10c] ss:$16 sps:$4 sm:$0xff]  }
 0x1a8   :  { %2228 = vmatpush1.bf16.msra.mxu1 %v3550_v35  ;;  %2188 = vmatprep.subr.bf16.mxu0 %v3555_v36  ;;  %v3630_v35 = vld [vmem:[#allocation2 + $0x30c] ss:$16 sps:$4 sm:$0xff]   ;;  %v3625_v36 = vld [vmem:[#allocation2 + $0x108] ss:$16 sps:$4 sm:$0xff]  }
 0x1a9   :  { %2229 = vmatprep.subr.bf16.mxu1 %v3558_v37  ;;  %v3628_v37 = vld [vmem:[#allocation2 + $0x308] ss:$16 sps:$4 sm:$0xff]  }
 0x1ab   :  { %2189 = vmatpush1.bf16.msra.mxu0 %v3553_v39  ;;  %v3633_v39 = vld [vmem:[#allocation2 + $0x4ec] ss:$16 sps:$4 sm:$0xff]  }
 0x1ac   :  { %2230 = vmatpush1.bf16.msra.mxu1 %v3556_v43  ;;  %2190 = vmatprep.subr.bf16.mxu0 %v3561_v44  ;;  %v3636_v43 = vld [vmem:[#allocation2 + $0x6ec] ss:$16 sps:$4 sm:$0xff]   ;;  %v3631_v44 = vld [vmem:[#allocation2 + $0x4e8] ss:$16 sps:$4 sm:$0xff]  }
 0x1ad   :  { %2231 = vmatprep.subr.bf16.mxu1 %v3564_v45  ;;  %v3634_v45 = vld [vmem:[#allocation2 + $0x6e8] ss:$16 sps:$4 sm:$0xff]  }
 0x1af   :  { %2191 = vmatpush1.bf16.msra.mxu0 %v3559_v46  ;;  %v3639_v46 = vld [vmem:[#allocation2 + $0x4cc] ss:$16 sps:$4 sm:$0xff]  }
 0x1b0   :  { %2232 = vmatpush1.bf16.msra.mxu1 %v3562_v7  ;;  %2192 = vmatprep.subr.bf16.mxu0 %v3567_v10  ;;  %v3642_v7 = vld [vmem:[#allocation2 + $0x6cc] ss:$16 sps:$4 sm:$0xff]   ;;  %v3637_v10 = vld [vmem:[#allocation2 + $0x4c8] ss:$16 sps:$4 sm:$0xff]  }
 0x1b1   :  { %2233 = vmatprep.subr.bf16.mxu1 %v3570_v47  ;;  %v3640_v47 = vld [vmem:[#allocation2 + $0x6c8] ss:$16 sps:$4 sm:$0xff]  }
 0x1b3   :  { %2193 = vmatpush1.bf16.msra.mxu0 %v3565_v1  ;;  %v3645_v1 = vld [vmem:[#allocation2 + $0x4ac] ss:$16 sps:$4 sm:$0xff]  }
 0x1b4   :  { %2234 = vmatpush1.bf16.msra.mxu1 %v3568_v48  ;;  %2194 = vmatprep.subr.bf16.mxu0 %v3573_v49  ;;  %v3648_v48 = vld [vmem:[#allocation2 + $0x6ac] ss:$16 sps:$4 sm:$0xff]   ;;  %v3643_v49 = vld [vmem:[#allocation2 + $0x4a8] ss:$16 sps:$4 sm:$0xff]  }
 0x1b5   :  { %2235 = vmatprep.subr.bf16.mxu1 %v3576_v51  ;;  %v3646_v51 = vld [vmem:[#allocation2 + $0x6a8] ss:$16 sps:$4 sm:$0xff]  }
 0x1b7   :  { %2195 = vmatpush1.bf16.msra.mxu0 %v3571_v52  ;;  %v3649_v52 = vld [vmem:[#allocation2 + $0x488] ss:$16 sps:$4 sm:$0xff]  }
 0x1b8   :  { %2236 = vmatpush1.bf16.msra.mxu1 %v3574_v54  ;;  %2196 = vmatprep.subr.bf16.mxu0 %v3579_v55  ;;  %v3652_v54 = vld [vmem:[#allocation2 + $0x688] ss:$16 sps:$4 sm:$0xff]   ;;  %v3657_v55 = vld [vmem:[#allocation2 + $0x46c] ss:$16 sps:$4 sm:$0xff]  }
 0x1b9   :  { %2237 = vmatprep.subr.bf16.mxu1 %v3582_v56  ;;  %v3660_v56 = vld [vmem:[#allocation2 + $0x66c] ss:$16 sps:$4 sm:$0xff]  }
 0x1bb   :  { %2197 = vmatpush1.bf16.msra.mxu0 %v3577_v58  ;;  %v3663_v58 = vld [vmem:[#allocation2 + $0x44c] ss:$16 sps:$4 sm:$0xff]  }
 0x1bc   :  { %2238 = vmatpush1.bf16.msra.mxu1 %v3580_v59  ;;  %2198 = vmatprep.subr.bf16.mxu0 %v3585_v60  ;;  %v3666_v59 = vld [vmem:[#allocation2 + $0x64c] ss:$16 sps:$4 sm:$0xff]   ;;  %v3661_v60 = vld [vmem:[#allocation2 + $0x448] ss:$16 sps:$4 sm:$0xff]  }
 0x1bd   :  { %2239 = vmatprep.subr.bf16.mxu1 %v3588_v63  ;;  %v3664_v63 = vld [vmem:[#allocation2 + $0x648] ss:$16 sps:$4 sm:$0xff]  }
 0x1bf   :  { %2199 = vmatpush2.bf16.msra.mxu0 %v3583_v0  ;;  %v3669_v0 = vld [vmem:[#allocation2 + $0x42c] ss:$16 sps:$4 sm:$0xff]  }
 0x1c0   :  { %2240 = vmatpush2.bf16.msra.mxu1 %v3586_v2  ;;  %2200 = vmatprep.subr.bf16.mxu0 %v3591_v4  ;;  %v3672_v2 = vld [vmem:[#allocation2 + $0x62c] ss:$16 sps:$4 sm:$0xff]   ;;  %v3667_v4 = vld [vmem:[#allocation2 + $0x428] ss:$16 sps:$4 sm:$0xff]  }
 0x1c1   :  { %2241 = vmatprep.subr.bf16.mxu1 %v3594_v5  ;;  %v3670_v5 = vld [vmem:[#allocation2 + $0x628] ss:$16 sps:$4 sm:$0xff]  }
 0x1c3   :  { %2201 = vmatpush2.bf16.msra.mxu0 %v3589_v6  ;;  %v3675_v6 = vld [vmem:[#allocation2 + $0x40c] ss:$16 sps:$4 sm:$0xff]  }
 0x1c4   :  { %2242 = vmatpush2.bf16.msra.mxu1 %v3592_v8  ;;  %2202 = vmatprep.subr.bf16.mxu0 %v3597_v9  ;;  %v3678_v8 = vld [vmem:[#allocation2 + $0x60c] ss:$16 sps:$4 sm:$0xff]   ;;  %v3673_v9 = vld [vmem:[#allocation2 + $0x408] ss:$16 sps:$4 sm:$0xff]  }
 0x1c5   :  { %2243 = vmatprep.subr.bf16.mxu1 %v3600_v11  ;;  %v3676_v11 = vld [vmem:[#allocation2 + $0x608] ss:$16 sps:$4 sm:$0xff]  }
 0x1c7   :  { %2203 = vmatpush2.bf16.msra.mxu0 %v3595_v12  ;;  %v3681_v12 = vld [vmem:[#allocation2 + $0x5ec] ss:$16 sps:$4 sm:$0xff]  }
 0x1c8   :  { %2244 = vmatpush2.bf16.msra.mxu1 %v3598_v13  ;;  %2204 = vmatprep.subr.bf16.mxu0 %v3603_v14  ;;  %v3684_v13 = vld [vmem:[#allocation2 + $0x7ec] ss:$16 sps:$4 sm:$0xff]   ;;  %v3679_v14 = vld [vmem:[#allocation2 + $0x5e8] ss:$16 sps:$4 sm:$0xff]  }
 0x1c9   :  { %2245 = vmatprep.subr.bf16.mxu1 %v3606_v15  ;;  %v3682_v15 = vld [vmem:[#allocation2 + $0x7e8] ss:$16 sps:$4 sm:$0xff]  }
 0x1cb   :  { %2205 = vmatpush2.bf16.msra.mxu0 %v3601_v16  ;;  %v3687_v16 = vld [vmem:[#allocation2 + $0x5cc] ss:$16 sps:$4 sm:$0xff]  }
 0x1cc   :  { %2246 = vmatpush2.bf16.msra.mxu1 %v3604_v17  ;;  %2206 = vmatprep.subr.bf16.mxu0 %v3609_v18  ;;  %v3690_v17 = vld [vmem:[#allocation2 + $0x7cc] ss:$16 sps:$4 sm:$0xff]   ;;  %v3685_v18 = vld [vmem:[#allocation2 + $0x5c8] ss:$16 sps:$4 sm:$0xff]  }
 0x1cd   :  { %2247 = vmatprep.subr.bf16.mxu1 %v3612_v19  ;;  %v3688_v19 = vld [vmem:[#allocation2 + $0x7c8] ss:$16 sps:$4 sm:$0xff]  }
 0x1cf   :  { %2207 = vmatpush2.bf16.msra.mxu0 %v3607_v20  ;;  %v3693_v20 = vld [vmem:[#allocation2 + $0x5ac] ss:$16 sps:$4 sm:$0xff]  }
 0x1d0   :  { %2248 = vmatpush2.bf16.msra.mxu1 %v3610_v21  ;;  %2208 = vmatprep.subr.bf16.mxu0 %v3615_v22  ;;  %v3696_v21 = vld [vmem:[#allocation2 + $0x7ac] ss:$16 sps:$4 sm:$0xff]   ;;  %v3691_v22 = vld [vmem:[#allocation2 + $0x5a8] ss:$16 sps:$4 sm:$0xff]  }
 0x1d1   :  { %2249 = vmatprep.subr.bf16.mxu1 %v3618_v24  ;;  %v3694_v24 = vld [vmem:[#allocation2 + $0x7a8] ss:$16 sps:$4 sm:$0xff]  }
 0x1d3   :  { %2209 = vmatpush2.bf16.msra.mxu0 %v3613_v25  ;;  %v3699_v25 = vld [vmem:[#allocation2 + $0x58c] ss:$16 sps:$4 sm:$0xff]  }
 0x1d4   :  { %2250 = vmatpush2.bf16.msra.mxu1 %v3616_v27  ;;  %2210 = vmatprep.subr.bf16.mxu0 %v3621_v28  ;;  %v3702_v27 = vld [vmem:[#allocation2 + $0x78c] ss:$16 sps:$4 sm:$0xff]   ;;  %v3697_v28 = vld [vmem:[#allocation2 + $0x588] ss:$16 sps:$4 sm:$0xff]  }
 0x1d5   :  { %2251 = vmatprep.subr.bf16.mxu1 %v3624_v30  ;;  %v3700_v30 = vld [vmem:[#allocation2 + $0x788] ss:$16 sps:$4 sm:$0xff]  }
 0x1d7   :  { %2211 = vmatpush2.bf16.msra.mxu0 %v3619_v32  ;;  %v3705_v32 = vld [vmem:[#allocation2 + $0x56c] ss:$16 sps:$4 sm:$0xff]  }
 0x1d8   :  { %2252 = vmatpush2.bf16.msra.mxu1 %v3622_v33  ;;  %2212 = vmatprep.subr.bf16.mxu0 %v3627_v34  ;;  %v3708_v33 = vld [vmem:[#allocation2 + $0x76c] ss:$16 sps:$4 sm:$0xff]   ;;  %v3703_v34 = vld [vmem:[#allocation2 + $0x568] ss:$16 sps:$4 sm:$0xff]  }
 0x1d9   :  { %2253 = vmatprep.subr.bf16.mxu1 %v3630_v35  ;;  %v3706_v35 = vld [vmem:[#allocation2 + $0x768] ss:$16 sps:$4 sm:$0xff]  }
 0x1db   :  { %2213 = vmatpush2.bf16.msra.mxu0 %v3625_v36  ;;  %v3711_v36 = vld [vmem:[#allocation2 + $0x54c] ss:$16 sps:$4 sm:$0xff]  }
 0x1dc   :  { %2254 = vmatpush2.bf16.msra.mxu1 %v3628_v37  ;;  %2264 = vmatprep.subr.bf16.mxu0 %v3633_v39  ;;  %v3714_v37 = vld [vmem:[#allocation2 + $0x74c] ss:$16 sps:$4 sm:$0xff]   ;;  %v3709_v39 = vld [vmem:[#allocation2 + $0x548] ss:$16 sps:$4 sm:$0xff]  }
 0x1dd   :  { %2305 = vmatprep.subr.bf16.mxu1 %v3636_v43  ;;  %v3712_v43 = vld [vmem:[#allocation2 + $0x748] ss:$16 sps:$4 sm:$0xff]  }
 0x1de   :  { %2215 = vmatmul.mubr.bf16.vlgmr.msra.gmra.mxu0 %v4038_v62  ;;  %v3651_v62 = vld [vmem:[#allocation2 + $0x48c] ss:$16 sps:$4 sm:$0xff]  }
 0x1df   :  { %2256 = vmatmul.mubr.bf16.vlgmr.msra.gmra.mxu1 %v4041_v3  ;;  %2265 = vmatpush1.bf16.msra.mxu0 %v3631_v44  ;;  %v3654_v3 = vld [vmem:[#allocation2 + $0x68c] ss:$16 sps:$4 sm:$0xff]  }
 0x1e0   :  { %2306 = vmatpush1.bf16.msra.mxu1 %v3634_v45  ;;  %2266 = vmatprep.subr.bf16.mxu0 %v3639_v46  ;;  %v3717_v44 = vld [vmem:[#allocation2 + $0x52c] ss:$16 sps:$4 sm:$0xff]   ;;  %v3715_v46 = vld [vmem:[#allocation2 + $0x528] ss:$16 sps:$4 sm:$0xff]  }
 0x1e1   :  { %2307 = vmatprep.subr.bf16.mxu1 %v3642_v7  ;;  %2296 = vmatprep.mubr.bf16.mxu0 %v4054_v29  ;;  %v3655_v29 = vld [vmem:[#allocation2 + $0x468] ss:$16 sps:$4 sm:$0xff]   ;;  %v3720_v45 = vld [vmem:[#allocation2 + $0x72c] ss:$16 sps:$4 sm:$0xff]  }
 0x1e2   :  { %2337 = vmatprep.mubr.bf16.mxu1 %v4056_v31  ;;  %v3658_v31 = vld [vmem:[#allocation2 + $0x668] ss:$16 sps:$4 sm:$0xff]  }
 0x1e3   :  { %2267 = vmatpush1.bf16.msra.mxu0 %v3637_v10  ;;  %v3718_v7 = vld [vmem:[#allocation2 + $0x728] ss:$16 sps:$4 sm:$0xff]   ;;  %v3723_v10 = vld [vmem:[#allocation2 + $0x50c] ss:$16 sps:$4 sm:$0xff]  }
 0x1e4   :  { %2308 = vmatpush1.bf16.msra.mxu1 %v3640_v47  ;;  %2268 = vmatprep.subr.bf16.mxu0 %v3645_v1  ;;  %v3726_v47 = vld [vmem:[#allocation2 + $0x70c] ss:$16 sps:$4 sm:$0xff]   ;;  %v3721_v1 = vld [vmem:[#allocation2 + $0x508] ss:$16 sps:$4 sm:$0xff]  }
 0x1e5   :  { %2309 = vmatprep.subr.bf16.mxu1 %v3648_v48  ;;  %v3724_v48 = vld [vmem:[#allocation2 + $0x708] ss:$16 sps:$4 sm:$0xff]  }
 0x1e7   :  { %2269 = vmatpush1.bf16.msra.mxu0 %v3643_v49  ;;  %v3727_v49 = vld [vmem:[#allocation3 + $0x78] sm:$0xff]  }
 0x1e8   :  { %2310 = vmatpush1.bf16.msra.mxu1 %v3646_v51  ;;  %2270 = vmatprep.subr.bf16.mxu0 %v3651_v62  ;;  %v3728_v51 = vld [vmem:[#allocation3 + $0x38] sm:$0xff]   ;;  %v3729_v62 = vld [vmem:[#allocation3 + $0x70] sm:$0xff]  }
 0x1e9   :  { %2311 = vmatprep.subr.bf16.mxu1 %v3654_v3 }
 0x1eb   :  { %2271 = vmatpush1.bf16.msra.mxu0 %v3649_v52 }
 0x1ec   :  { %2312 = vmatpush1.bf16.msra.mxu1 %v3652_v54  ;;  %2272 = vmatprep.subr.bf16.mxu0 %v3657_v55  ;;  %v3730_v54 = vld [vmem:[#allocation3 + $0x30] sm:$0xff]  }
 0x1ed   :  { %2313 = vmatprep.subr.bf16.mxu1 %v3660_v56 }
 0x1ef   :  { %2273 = vmatpush1.bf16.msra.mxu0 %v3655_v29  ;;  %v3731_v29 = vld [vmem:[#allocation3 + $0x68] sm:$0xff]  }
 0x1f0   :  { %2314 = vmatpush1.bf16.msra.mxu1 %v3658_v31  ;;  %2274 = vmatprep.subr.bf16.mxu0 %v3663_v58 }
 0x1f1   :  { %2315 = vmatprep.subr.bf16.mxu1 %v3666_v59  ;;  %v3732_v59 = vld [vmem:[#allocation3 + $0x28] sm:$0xff]  }
 0x1f3   :  { %2275 = vmatpush1.bf16.msra.mxu0 %v3661_v60 }
 0x1f4   :  { %2316 = vmatpush1.bf16.msra.mxu1 %v3664_v63  ;;  %2276 = vmatprep.subr.bf16.mxu0 %v3669_v0  ;;  %v3733_v0 = vld [vmem:[#allocation3 + $0x60] sm:$0xff]  }
 0x1f5   :  { %2317 = vmatprep.subr.bf16.mxu1 %v3672_v2  ;;  %v3743_v2 = vld [vmem:[#allocation3 + $0xf8] sm:$0xff]  }
 0x1f7   :  { %2277 = vmatpush1.bf16.msra.mxu0 %v3667_v4  ;;  %v3744_v4 = vld [vmem:[#allocation3 + $0xb8] sm:$0xff]  }
 0x1f8   :  { %2318 = vmatpush1.bf16.msra.mxu1 %v3670_v5  ;;  %2278 = vmatprep.subr.bf16.mxu0 %v3675_v6  ;;  %v3736_v5 = vld [vmem:[#allocation3 + $0x18] sm:$0xff]   ;;  %v3737_v6 = vld [vmem:[#allocation3 + $0x50] sm:$0xff]  }
 0x1f9   :  { %2319 = vmatprep.subr.bf16.mxu1 %v3678_v8  ;;  %v3738_v8 = vld [vmem:[#allocation3 + $0x10] sm:$0xff]  }
 0x1fb   :  { %2279 = vmatpush1.bf16.msra.mxu0 %v3673_v9  ;;  %v3739_v9 = vld [vmem:[#allocation3 + $0x48] sm:$0xff]  }
 0x1fc   :  { %2320 = vmatpush1.bf16.msra.mxu1 %v3676_v11  ;;  %2280 = vmatprep.subr.bf16.mxu0 %v3681_v12  ;;  %v3740_v11 = vld [vmem:[#allocation3 + $0x8] sm:$0xff]   ;;  %v3741_v12 = vld [vmem:[#allocation3 + $0x40] sm:$0xff]  }
 0x1fd   :  { %2321 = vmatprep.subr.bf16.mxu1 %v3684_v13  ;;  %v3742_v13 = vld [vmem:[#allocation3] sm:$0xff]  }
 0x1ff   :  { %2281 = vmatpush2.bf16.msra.mxu0 %v3679_v14  ;;  %v4085_v14 = vld [vmem:[#allocation13] sm:$0xff] }
 0x200   :  { %2322 = vmatpush2.bf16.msra.mxu1 %v3682_v15  ;;  %2282 = vmatprep.subr.bf16.mxu0 %v3687_v16  ;;  %v4087_v15 = vpop.permute.xlu1 %2375  ;;  %v4089_v16 = vld [vmem:[#allocation13 + $0x8] sm:$0xff] }
 0x201   :  { %2323 = vmatprep.subr.bf16.mxu1 %v3690_v17  ;;  %v721_v17 = vrot.slane %v4085_v14, %v4018_v38 }
 0x203   :  { %2283 = vmatpush2.bf16.msra.mxu0 %v3685_v18  ;;  %v4093_v18 = vpop.permute.xlu0 %715 }
 0x204   :  { %2324 = vmatpush2.bf16.msra.mxu1 %v3688_v19  ;;  %2284 = vmatprep.subr.bf16.mxu0 %v3693_v20  ;;  %v725_v19 = vrot.slane %v4089_v16, %v4018_v38  ;;  %v734_v20 = vmul.f32 %v721_v17, %v4093_v18  ;;  %v2497_v17 = vrot.slane %v4089_v16, %v4032_v53 }
 0x205   :  { %2325 = vmatprep.subr.bf16.mxu1 %v3696_v21  ;;  %v4098_v21 = vpop.permute.xlu1 %2403 }
 0x207   :  { %2285 = vmatpush2.bf16.msra.mxu0 %v3691_v22  ;;  %v735_v22 = vmul.f32 %v725_v19, %v4093_v18  ;;  %v2521_v19 = vrot.slane %v4085_v14, %v4036_v61 }
 0x208   :  { %2326 = vmatpush2.bf16.msra.mxu1 %v3694_v24  ;;  %2286 = vmatprep.subr.bf16.mxu0 %v3699_v25 }
 0x209   :  { %2327 = vmatprep.subr.bf16.mxu1 %v3702_v27  ;;  %v2353_v27 = vrot.slane %v4085_v14, %v4022_v41 }
 0x20b   :  { %2287 = vmatpush2.bf16.msra.mxu0 %v3697_v28  ;;  %v4103_v28 = vpop.permute.xlu1 %2431 }
 0x20c   :  { %2328 = vmatpush2.bf16.msra.mxu1 %v3700_v30  ;;  %2288 = vmatprep.subr.bf16.mxu0 %v3705_v32  ;;  %v4105_v30 = vpop.permute.xlu0 %2347  ;;  %v3745_v32 = vld [vmem:[#allocation3 + $0xf0] sm:$0xff]  }
 0x20d   :  { %2329 = vmatprep.subr.bf16.mxu1 %v3708_v33 }
 0x20f   :  { %2289 = vmatpush2.bf16.msra.mxu0 %v3703_v34  ;;  %v2381_v34 = vrot.slane %v4085_v14, %v4020_v40 }
 0x210   :  { %2330 = vmatpush2.bf16.msra.mxu1 %v3706_v35  ;;  %2290 = vmatprep.subr.bf16.mxu0 %v3711_v36  ;;  %v2357_v35 = vrot.slane %v4089_v16, %v4022_v41  ;;  %v3746_v36 = vld [vmem:[#allocation3 + $0xb0] sm:$0xff]  }
 0x211   :  { %2331 = vmatprep.subr.bf16.mxu1 %v3714_v37  ;;  %v2385_v37 = vrot.slane %v4089_v16, %v4020_v40 }
 0x213   :  { %2291 = vmatpush2.bf16.msra.mxu0 %v3709_v39 }
 0x214   :  { %2332 = vmatpush2.bf16.msra.mxu1 %v3712_v43  ;;  %2292 = vmatprep.subr.bf16.mxu0 %v3717_v44 }
 0x215   :  { %2333 = vmatprep.subr.bf16.mxu1 %v3720_v45 }
 0x217   :  { %2293 = vmatpush2.bf16.msra.mxu0 %v3715_v46  ;;  %v2409_v46 = vrot.slane %v4085_v14, %v4024_v42 }
 0x218   :  { %2334 = vmatpush2.bf16.msra.mxu1 %v3718_v7  ;;  %2294 = vmatprep.subr.bf16.mxu0 %v3723_v10  ;;  %v2366_v7 = vmul.f32 %v2353_v27, %v4105_v30  ;;  %v2413_v10 = vrot.slane %v4089_v16, %v4024_v42  ;;  %v2525_v27 = vrot.slane %v4089_v16, %v4036_v61 }
 0x219   :  { %2335 = vmatprep.subr.bf16.mxu1 %v3726_v47 }
 0x21b   :  { %2295 = vmatpush2.bf16.msra.mxu0 %v3721_v1 }
 0x21c   :  { %2336 = vmatpush2.bf16.msra.mxu1 %v3724_v48  ;;  %3273 = vmatprep.subr.bf16.mxu0 %v3727_v49  ;;  %v2437_v48 = vrot.slane %v4085_v14, %v4030_v50  ;;  %v3747_v49 = vld [vmem:[#allocation3 + $0xe8] sm:$0xff]  }
 0x21d   :  { %3295 = vmatprep.subr.bf16.mxu1 %v3743_v2  ;;  %v4130_v2 = vpop.permute.xlu0 %2459 }
 0x21e   :  { %v2052_v3 = vpop.f32.mrf.mxu0  ;;  %2297 = vmatmul.mubr.bf16.vlgmr.msra.gmra.mxu0 %v4050_v23  ;;  %v3734_v23 = vld [vmem:[#allocation3 + $0x20] sm:$0xff]  }
 0x21f   :  { %v2093_v52 = vpop.f32.mrf.mxu1  ;;  %2338 = vmatmul.mubr.bf16.vlgmr.msra.gmra.mxu1 %v4052_v26  ;;  %3274 = vmatpush3.bf16.msra.mxu0 %v3728_v51  ;;  %v3735_v26 = vld [vmem:[#allocation3 + $0x58] sm:$0xff]   ;;  %v2053_v24 = vadd.f32 %v2052_v3, %v734_v20  ;;  %v2394_v51 = vmul.f32 %v2381_v34, %v4087_v15 }
 0x220   :  { %v2054_v55 = vpop.f32.mrf.mxu0  ;;  %3275 = vmatprep.subr.bf16.mxu0 %v3729_v62  ;;  %3296 = vmatpush3.bf16.msra.mxu1 %v3744_v4 }
 0x221   :  { %v2095_v56 = vpop.f32.mrf.mxu1  ;;  %v2055_v25 = vadd.f32 %v2054_v55, %v735_v22  ;;  %v2094_v33 = vadd.f32 %v2093_v52, %v2053_v24  ;;  %3297 = vmatprep.subr.bf16.mxu1 %v3745_v32  ;;  %v2367_v52 = vmul.f32 %v2357_v35, %v4105_v30  ;;  %v3748_v55 = vld [vmem:[#allocation3 + $0xa8] sm:$0xff]  }
 0x222   :  { %v2056_v31 = vpop.f32.mrf.mxu0 }
 0x223   :  { %v2097_v58 = vpop.f32.mrf.mxu1  ;;  %3276 = vmatpush3.bf16.msra.mxu0 %v3730_v54  ;;  %v2096_v44 = vadd.f32 %v2095_v56, %v2055_v25  ;;  %v4122_v54 = vpop.permute.xlu1 %2487  ;;  %v2441_v31 = vrot.slane %v4089_v16, %v4030_v50 }
 0x224   :  { %v2057_v60 = vpop.f32.mrf.mxu0  ;;  %3277 = vmatprep.subr.bf16.mxu0 %v3731_v29  ;;  %3298 = vmatpush3.bf16.msra.mxu1 %v3746_v36  ;;  %v2465_v58 = vrot.slane %v4085_v14, %v4034_v57 }
 0x225   :  { %v2098_v63 = vpop.f32.mrf.mxu1  ;;  %3299 = vmatprep.subr.bf16.mxu1 %v3747_v49  ;;  %v2422_v60 = vmul.f32 %v2409_v46, %v4098_v21  ;;  %v2451_v24 = vmul.f32 %v2441_v31, %v4103_v28  ;;  %v3753_v46 = vld [vmem:[#allocation3 + $0xd0] sm:$0xff]   ;;  %v3755_v49 = vld [vmem:[#allocation3 + $0xc8] sm:$0xff]  }
 0x226   :  { %v2478_v25 = vmul.f32 %v2465_v58, %v4130_v2  ;;  %v3758_v58 = vld [vmem:[#allocation3 + $0x80] sm:$0xff]  }
 0x227   :  { %3278 = vmatpush3.bf16.msra.mxu0 %v3732_v59  ;;  %v2395_v59 = vmul.f32 %v2385_v37, %v4087_v15  ;;  %v4146_v32 = vpop.permute.xlu1 %2515  ;;  %v3752_v37 = vld [vmem:[#allocation3 + $0x98] sm:$0xff]  }
 0x228   :  { %3279 = vmatprep.subr.bf16.mxu0 %v3733_v0  ;;  %3300 = vmatpush3.bf16.msra.mxu1 %v3748_v55  ;;  %v3757_v55 = vld [vmem:[#allocation3 + $0xc0] sm:$0xff]  }
 0x22b   :  { %3280 = vmatpush3.bf16.msra.mxu0 %v3734_v23 }
 0x22c   :  { %3281 = vmatprep.subr.bf16.mxu0 %v3735_v26  ;;  %v2493_v26 = vrot.slane %v4085_v14, %v4032_v53 }
 0x22e   :  { %v2506_v36 = vmul.f32 %v2493_v26, %v4122_v54 }
 0x22f   :  { %3282 = vmatpush3.bf16.msra.mxu0 %v3736_v5  ;;  %v2469_v5 = vrot.slane %v4089_v16, %v4034_v57 }
 0x230   :  { %3283 = vmatprep.subr.bf16.mxu0 %v3737_v6  ;;  %v3749_v6 = vld [vmem:[#allocation3 + $0xe0] sm:$0xff]  }
 0x231   :  { %3301 = vmatprep.subr.bf16.mxu1 %v3749_v6  ;;  %v2479_v14 = vmul.f32 %v2469_v5, %v4130_v2 }
 0x233   :  { %3284 = vmatpush3.bf16.msra.mxu0 %v3738_v8  ;;  %v2423_v8 = vmul.f32 %v2413_v10, %v4098_v21 }
 0x234   :  { %3285 = vmatprep.subr.bf16.mxu0 %v3739_v9 }
 0x237   :  { %3286 = vmatpush3.bf16.msra.mxu0 %v3740_v11 }
 0x238   :  { %3287 = vmatprep.subr.bf16.mxu0 %v3741_v12  ;;  %v2450_v12 = vmul.f32 %v2437_v48, %v4103_v28  ;;  %v3754_v48 = vld [vmem:[#allocation3 + $0x90] sm:$0xff]  }
 0x23b   :  { %3288 = vmatpush3.bf16.msra.mxu0 %v3742_v13  ;;  %v3750_v13 = vld [vmem:[#allocation3 + $0xa0] sm:$0xff]  }
 0x23c   :  { %3302 = vmatpush3.bf16.msra.mxu1 %v3750_v13 }
 0x25e   :  { %v2134_v39 = vpop.f32.mrf.mxu0 }
 0x25f   :  { %v2175_v43 = vpop.f32.mrf.mxu1  ;;  %v2135_v45 = vadd.f32 %v2134_v39, %v2094_v33  ;;  %v3751_v33 = vld [vmem:[#allocation3 + $0xd8] sm:$0xff]   ;;  %v4153_v39 = vld [vmem:[%s4223_s6] sm:$0xf] }
 0x260   :  { %v2136_v47 = vpop.f32.mrf.mxu0  ;;  %3303 = vmatprep.subr.bf16.mxu1 %v3751_v33  ;;  %v2547_v10 = vrot.slane %v4153_v39, %v4018_v38 }
 0x261   :  { %v2177_v1 = vpop.f32.mrf.mxu1  ;;  %v2176_v62 = vadd.f32 %v2175_v43, %v2135_v45  ;;  %v2137_v3 = vadd.f32 %v2136_v47, %v2096_v44  ;;  %v2507_v44 = vmul.f32 %v2497_v17, %v4122_v54  ;;  %v2534_v45 = vmul.f32 %v2521_v19, %v4146_v32  ;;  %3304 = vmatpush3.bf16.msra.mxu1 %v3752_v37 }
 0x262   :  { %v2138_v56 = vpop.f32.mrf.mxu0  ;;  %3305 = vmatprep.subr.bf16.mxu1 %v3753_v46 }
 0x263   :  { %v2179_v29 = vpop.f32.mrf.mxu1  ;;  %v2370_v63 = vadd.f32 %v2366_v7, %v2176_v62  ;;  %v2178_v0 = vadd.f32 %v2177_v1, %v2137_v3  ;;  %v2535_v1 = vmul.f32 %v2525_v27, %v4146_v32  ;;  %v2551_v3 = vrot.slane %v4153_v39, %v4022_v41 }
 0x264   :  { %v2139_v4 = vpop.f32.mrf.mxu0 }
 0x265   :  { %v2180_v23 = vpop.f32.mrf.mxu1  ;;  %v2398_v9 = vadd.f32 %v2394_v51, %v2370_v63  ;;  %v2371_v11 = vadd.f32 %v2367_v52, %v2178_v0  ;;  %3306 = vmatpush3.bf16.msra.mxu1 %v3754_v48  ;;  %v3756_v52 = vld [vmem:[#allocation3 + $0x88] sm:$0xff]  }
 0x266   :  { %3307 = vmatprep.subr.bf16.mxu1 %v3755_v49  ;;  %v4162_v4 = vld [vmem:[#allocation13 + $0x10] sm:$0xff] }
 0x267   :  { %v2399_v20 = vadd.f32 %v2395_v59, %v2371_v11  ;;  %v2426_v22 = vadd.f32 %v2422_v60, %v2398_v9  ;;  %v729_v23 = vrot.slane %v4162_v4, %v4018_v38  ;;  %v2361_v33 = vrot.slane %v4162_v4, %v4022_v41 }
 0x269   :  { %v2427_v34 = vadd.f32 %v2423_v8, %v2399_v20  ;;  %v2454_v35 = vadd.f32 %v2450_v12, %v2426_v22  ;;  %3308 = vmatpush3.bf16.msra.mxu1 %v3756_v52  ;;  %v736_v26 = vmul.f32 %v729_v23, %v4093_v18  ;;  %v712_v22 = vld [vmem:[#allocation13 + $0x18] sm:$0xff] }
 0x26a   :  { %3309 = vmatprep.subr.bf16.mxu1 %v3757_v55  ;;  %v2449_v52 = vrot.slane %v712_v22, %v4030_v50 }
 0x26b   :  { %v2455_v43 = vadd.f32 %v2451_v24, %v2427_v34  ;;  %v2482_v16 = vadd.f32 %v2478_v25, %v2454_v35  ;;  %v733_v24 = vrot.slane %v712_v22, %v4018_v38  ;;  %v2389_v34 = vrot.slane %v4162_v4, %v4020_v40 }
 0x26c   :  { %v2393_v38 = vrot.slane %v712_v22, %v4020_v40 }
 0x26d   :  { %v2483_v7 = vadd.f32 %v2479_v14, %v2455_v43  ;;  %v2510_v47 = vadd.f32 %v2506_v36, %v2482_v16  ;;  %3310 = vmatpush3.bf16.msra.mxu1 %v3758_v58  ;;  %v737_v25 = vmul.f32 %v733_v24, %v4093_v18  ;;  %v2368_v43 = vmul.f32 %v2361_v33, %v4105_v30 }
 0x26e   :  { %v2417_v18 = vrot.slane %v4162_v4, %v4024_v42 }
 0x26f   :  { %v2511_v51 = vadd.f32 %v2507_v44, %v2483_v7  ;;  %v2538_v62 = vadd.f32 %v2534_v45, %v2510_v47  ;;  %v2365_v44 = vrot.slane %v712_v22, %v4022_v41  ;;  %v2445_v47 = vrot.slane %v4162_v4, %v4030_v50 }
 0x270   :  { %v2396_v41 = vmul.f32 %v2389_v34, %v4087_v15 }
 0x271   :  { %v2539_v56 = vadd.f32 %v2535_v1, %v2511_v51  ;;  %v2564_v29 = vadd.f32 %v2547_v10, %v2538_v62  ;;  %v2421_v10 = vrot.slane %v712_v22, %v4024_v42  ;;  %v2473_v1 = vrot.slane %v4162_v4, %v4034_v57 }
 0x272   :  { %v2452_v50 = vmul.f32 %v2445_v47, %v4103_v28  ;;  %v3270_v47 = vld [vmem:[#allocation5] ss:$0 sm:$0xff] }
 0x273   :  { %v2565_v31 = vadd.f32 %v2551_v3, %v2539_v56  ;;  %v2568_v59 = vmax.f32 %v2564_v29, 0.0  ;;  %v2369_v3 = vmul.f32 %v2365_v44, %v4105_v30  ;;  %v2397_v29 = vmul.f32 %v2393_v38, %v4087_v15 }
 0x274   :  { %v2529_v30 = vrot.slane %v4162_v4, %v4036_v61  ;;  %v2480_v23 = vmul.f32 %v2473_v1, %v4130_v2 }
 0x275   :  { %v2569_v60 = vmax.f32 %v2565_v31, 0.0  ;;  %v2572_v0 = vpack.c.bf16 %v2568_v59, %v2568_v59  ;;  %v2424_v31 = vmul.f32 %v2417_v18, %v4098_v21 }
 0x277   :  { %v2573_v63 = vpack.c.bf16 %v2569_v60, %v2569_v60  ;;  %v2425_v60 = vmul.f32 %v2421_v10, %v4098_v21 }
 0x279   :  { %2871 = vmatprep.mubr.bf16.mxu0 %v2573_v63  ;;  %v2501_v63 = vrot.slane %v4162_v4, %v4032_v53  ;;  %v2536_v4 = vmul.f32 %v2529_v30, %v4146_v32 }
 0x27a   :  { %2872 = vmatmul.mubr.bf16.vlgmr.msra.gmra.mxu0 %v2572_v0  ;;  %v2477_v0 = vrot.slane %v712_v22, %v4034_v57 }
 0x27b   :  { %v2508_v57 = vmul.f32 %v2501_v63, %v4122_v54 }
 0x29e   :  { %v2216_v5 = vpop.f32.mrf.mxu0 }
 0x29f   :  { %v2257_v6 = vpop.f32.mrf.mxu1  ;;  %v2217_v8 = vadd.f32 %v2216_v5, %v736_v26  ;;  %v2453_v5 = vmul.f32 %v2449_v52, %v4103_v28  ;;  %v2555_v28 = vrot.slane %v4153_v39, %v4020_v40 }
 0x2a0   :  { %v2218_v9 = vpop.f32.mrf.mxu0 }
 0x2a1   :  { %v2259_v11 = vpop.f32.mrf.mxu1  ;;  %v2258_v12 = vadd.f32 %v2257_v6, %v2217_v8  ;;  %v2219_v27 = vadd.f32 %v2218_v9, %v737_v25  ;;  %v2505_v6 = vrot.slane %v712_v22, %v4032_v53  ;;  %v2481_v9 = vmul.f32 %v2477_v0, %v4130_v2 }
 0x2a2   :  { %v2220_v13 = vpop.f32.mrf.mxu0  ;;  %v2559_v2 = vrot.slane %v4153_v39, %v4024_v42 }
 0x2a3   :  { %v2261_v17 = vpop.f32.mrf.mxu1  ;;  %v2260_v14 = vadd.f32 %v2259_v11, %v2219_v27  ;;  %v2533_v11 = vrot.slane %v712_v22, %v4036_v61 }
 0x2a4   :  { %v2221_v19 = vpop.f32.mrf.mxu0  ;;  %v2509_v17 = vmul.f32 %v2505_v6, %v4122_v54 }
 0x2a5   :  { %v2262_v20 = vpop.f32.mrf.mxu1  ;;  %v2537_v53 = vmul.f32 %v2533_v11, %v4146_v32  ;;  %v3236_v32 = vld [vmem:[%s4225_s8] ss:$0 sm:$0xff] }
 0x2de   :  { %v2298_v35 = vpop.f32.mrf.mxu0 }
 0x2df   :  { %v2339_v36 = vpop.f32.mrf.mxu1  ;;  %v2299_v37 = vadd.f32 %v2298_v35, %v2258_v12 }
 0x2e0   :  { %v2300_v16 = vpop.f32.mrf.mxu0 }
 0x2e1   :  { %v2341_v45 = vpop.f32.mrf.mxu1  ;;  %v2340_v46 = vadd.f32 %v2339_v36, %v2299_v37  ;;  %v2301_v7 = vadd.f32 %v2300_v16, %v2260_v14 }
 0x2e2   :  { %v2302_v48 = vpop.f32.mrf.mxu0 }
 0x2e3   :  { %v2343_v49 = vpop.f32.mrf.mxu1  ;;  %v2372_v51 = vadd.f32 %v2368_v43, %v2340_v46  ;;  %v2342_v62 = vadd.f32 %v2341_v45, %v2301_v7  ;;  %v3269_v46 = vld [vmem:[%s4226_s9] ss:$0 sm:$0xff] }
 0x2e4   :  { %v2303_v55 = vpop.f32.mrf.mxu0 }
 0x2e5   :  { %v2344_v56 = vpop.f32.mrf.mxu1  ;;  %v2400_v58 = vadd.f32 %v2396_v41, %v2372_v51  ;;  %v2373_v59 = vadd.f32 %v2369_v3, %v2342_v62 }
 0x2e7   :  { %v2428_v26 = vadd.f32 %v2424_v31, %v2400_v58  ;;  %v2401_v15 = vadd.f32 %v2397_v29, %v2373_v59 }
 0x2e9   :  { %v2456_v8 = vadd.f32 %v2452_v50, %v2428_v26  ;;  %v2429_v21 = vadd.f32 %v2425_v60, %v2401_v15 }
 0x2eb   :  { %v2484_v12 = vadd.f32 %v2480_v23, %v2456_v8  ;;  %v2457_v13 = vadd.f32 %v2453_v5, %v2429_v21 }
 0x2ed   :  { %v2485_v19 = vadd.f32 %v2481_v9, %v2457_v13  ;;  %v2512_v20 = vadd.f32 %v2508_v57, %v2484_v12 }
 0x2ef   :  { %v2513_v24 = vadd.f32 %v2509_v17, %v2485_v19  ;;  %v2540_v61 = vadd.f32 %v2536_v4, %v2512_v20 }
 0x2f1   :  { %v2541_v22 = vadd.f32 %v2537_v53, %v2513_v24  ;;  %v2566_v25 = vadd.f32 %v2555_v28, %v2540_v61 }
 0x2f3   :  { %v2567_v27 = vadd.f32 %v2559_v2, %v2541_v22  ;;  %v2570_v33 = vmax.f32 %v2566_v25, 0.0 }
 0x2f5   :  { %v2571_v34 = vmax.f32 %v2567_v27, 0.0  ;;  %v2574_v36 = vpack.c.bf16 %v2570_v33, %v2570_v33 }
 0x2f7   :  { %v2575_v35 = vpack.c.bf16 %v2571_v34, %v2571_v34 }
 0x2f9   :  { %2911 = vmatprep.mubr.bf16.mxu1 %v2575_v35 }
 0x2fa   :  { %2912 = vmatmul.mubr.bf16.vlgmr.msra.gmra.mxu1 %v2574_v36 }
 0x33a   :  { %v3289_v54 = vpop.f32.mrf.mxu0 }
 0x33c   :  { %v3290_v14 = vpop.f32.mrf.mxu0 }
 0x33d   :  { %v3291_v37 = vadd.f32 %v3290_v14, %v3289_v54 }
 0x33e   :  { %v3292_v40 = vpop.f32.mrf.mxu0 }
 0x33f   :  { %v2874_v44 = vadd.f32 %v3291_v37, %v3236_v32 }
 0x340   :  { %v3293_v43 = vpop.f32.mrf.mxu0 }
 0x3ba   :  { %v3311_v42 = vpop.f32.mrf.mxu1 }
 0x3bc   :  { %v3312_v39 = vpop.f32.mrf.mxu1 }
 0x3bd   :  { %v3313_v16 = vadd.f32 %v3312_v39, %v3311_v42 }
 0x3be   :  { %v3314_v45 = vpop.f32.mrf.mxu1 }
 0x3bf   :  { %v2914_v38 = vadd.f32 %v3313_v16, %v2874_v44 }
 0x3c0   :  { %v3315_v18 = vpop.f32.mrf.mxu1 }
 0x3c1   :  { %v2919_v7 = vmax.f32 %v2914_v38, 0.0 }
 0x3c3   :  { %v2927_v10 = vmul.f32 %v3269_v46, %v2919_v7 }
 0x3c5   :  { %2928 = vadd.xlane.f32.xlu0 %v2927_v10 }
 0x44e   :  { %v2929_v1 = vpop.xlane.xlu0 %2928 }
 0x44f   :  { %v2937_v48 = vadd.f32 %v3270_v47, %v2929_v1 }
 0x451   :  { %2939 = vst.msk [vmem:[%s4228_s11] sm:$0xff] %vm2938_vm1, %v2937_v48 }
 0x452   :  { %2944 = vsyncpa [#allocation7], 1 }
 0x453   :  { %2945 = vsyncpa [#allocation9], 1 }
 0x454   :  { %2946 = vsyncpa [#allocation12], 1 }
 0x455   :  { %2947 = vsyncmov [#allocation4] }
 0x458   :  { %s2948_s14 = vpop.sfrf %2947 }
 0x459   :  { %p3271_p7 = scmp.ne.s32.totalorder %s2948_s14, 0 }
 0x45b   :  { %2952 = shalt.err (%p3271_p7)  }
 0x45c   :  { %2954 = vsyncmov [#allocation4 + $0x1] }
 0x45f   :  { %s2955_s9 = vpop.sfrf %2954 }
 0x460   :  { %p3272_p8 = scmp.ne.s32.totalorder %s2955_s9, 0 }
 0x462   :  { %2959 = shalt.err (%p3272_p8)  }

</bundles_post_ra>
